<compile_context>
chip_gen: v7x
topology: tpu7x:2x2x1
jax: 0.10.0
libtpu: 0.0.40
codegen_flags: <defaults>
</compile_context>

<pallas_src>
import functools

import jax
import jax.numpy as jnp
from jax import lax
from jax.experimental import pallas as pl
from jax.experimental.pallas import tpu as pltpu


# Tap offsets (dh, dw) — order must match the packed weight columns and masks.
_OFFSETS = tuple((dh, dw) for dh in (-1, 0, 1) for dw in (-1, 0, 1))


def _residual_block_kernel(x_ref, mask_ref, w1_ref, b1_ref, w2_ref, b2_ref,
                           out_ref, *, H, W):
    """One image per grid step.

    x_ref   : (C, H*W)   image; channels on sublanes, flat spatial on lanes
    mask_ref: (9, H*W)   f32 per-tap validity masks (SAME zero padding)
    w1_ref  : (C, 9*C)   w1[co, t*C + ci] = conv1 HWIO weight [t//3, t%3, ci, co]
    b1_ref  : (C, 1)
    w2_ref  : (C, 9*C)
    b2_ref  : (C, 1)
    out_ref : (C, H*W)
    """
    C, HW = out_ref.shape
    x = x_ref[...].astype(jnp.float32)

    def conv3x3(inp, w_ref, b_ref):
        # 9 shifted + masked copies of the tile. pltpu.roll rides the XLU slot,
        # so the rotations overlap the VPU FMAs below.
        taps = []
        for t, (dh, dw) in enumerate(_OFFSETS):
            s = dh * W + dw
            if s == 0:
                taps.append(inp)                       # centre tap: no shift/mask
            else:
                rolled = pltpu.roll(inp, shift=(-s) % HW, axis=1)
                taps.append(rolled * mask_ref[t:t + 1, :])
        # Channel mixing on the VPU: with C = 4 each weight is effectively a
        # scalar, so each (tap, ci) pair is one outer-product FMA on a
        # lane-dense (C, HW) tile, keeping the accumulator in vregs.
        acc = b_ref[...].astype(jnp.float32) + jnp.zeros((C, HW), jnp.float32)
        for t in range(9):
            tap = taps[t]
            for ci in range(C):
                k = t * C + ci
                wcol = w_ref[:, k:k + 1].astype(jnp.float32)   # (C, 1)
                acc = acc + wcol * tap[ci:ci + 1, :]           # (C, HW)
        return acc

    h = jnp.maximum(conv3x3(x, w1_ref, b1_ref), 0.0)   # conv1 + ReLU
    y = conv3x3(h, w2_ref, b2_ref)                     # conv2
    out_ref[...] = (y + x).astype(out_ref.dtype)       # + residual


def _pack_weights(w_hwio):
    """(3, 3, Cin, Cout) HWIO -> (Cout, 9*Cin); column order is (tap, ci)."""
    C = w_hwio.shape[2]
    return jnp.transpose(w_hwio.reshape(9 * C, C)).astype(jnp.float32)


def _tap_masks(H, W):
    """(9, H*W) f32 validity masks implementing the SAME zero padding."""
    rr = jnp.arange(H).reshape(H, 1)
    cc = jnp.arange(W).reshape(1, W)
    masks = []
    for dh, dw in _OFFSETS:
        valid = ((rr + dh >= 0) & (rr + dh < H) &
                 (cc + dw >= 0) & (cc + dw < W))
        masks.append(valid.reshape(H * W))
    return jnp.stack(masks, axis=0).astype(jnp.float32)


@jax.jit
def residual_block(x_nchw, w1_hwio, b1, w2_hwio, b2):
    """NCHW in / NCHW out, matching the PyTorch module's forward."""
    N, C, H, W = x_nchw.shape
    HW = H * W
    x3 = x_nchw.reshape(N, C, HW)          # contiguous -> free reshape, no pad
    masks = _tap_masks(H, W)               # tiny constant, folded under jit
    w1m, w2m = _pack_weights(w1_hwio), _pack_weights(w2_hwio)
    b1c = b1.reshape(C, 1).astype(jnp.float32)
    b2c = b2.reshape(C, 1).astype(jnp.float32)

    kernel = functools.partial(_residual_block_kernel, H=H, W=W)

    out3 = pl.pallas_call(
        kernel,
        out_shape=jax.ShapeDtypeStruct((N, C, HW), x_nchw.dtype),
        grid_spec=pltpu.PrefetchScalarGridSpec(
            num_scalar_prefetch=0,
            grid=(N,),                                     # one image per step
            in_specs=[
                pl.BlockSpec((pl.Squeezed(), C, HW), lambda n: (n, 0, 0)),
                pl.BlockSpec((9, HW), lambda n: (0, 0)),
                pl.BlockSpec((C, 9 * C), lambda n: (0, 0)),
                pl.BlockSpec((C, 1), lambda n: (0, 0)),
                pl.BlockSpec((C, 9 * C), lambda n: (0, 0)),
                pl.BlockSpec((C, 1), lambda n: (0, 0)),
            ],
            out_specs=pl.BlockSpec((pl.Squeezed(), C, HW),
                                   lambda n: (n, 0, 0)),
        ),
        compiler_params=pltpu.CompilerParams(
            dimension_semantics=("parallel",)),            # shardable on v7x
    )(x3, masks, w1m, b1c, w2m, b2c)

    return out3.reshape(N, C, H, W)


def _reference_forward(x_nchw, w1_hwio, b1, w2_hwio, b2):
    """Pure-JAX reference (lax.conv) for correctness checking."""
    x = jnp.transpose(x_nchw, (0, 2, 3, 1))
    dn = ('NHWC', 'HWIO', 'NHWC')
    y = lax.conv_general_dilated(x, w1_hwio, (1, 1), 'SAME',
                                 dimension_numbers=dn) + b1
    y = jnp.maximum(y, 0.0)
    y = lax.conv_general_dilated(y, w2_hwio, (1, 1), 'SAME',
                                 dimension_numbers=dn) + b2
    return jnp.transpose(y + x, (0, 3, 1, 2))


if __name__ == "__main__":
    # Small shapes consistent with the module: batch=2, channels=4, spatial=16.
    N, C, H, W = 2, 4, 16, 16

    key = jax.random.PRNGKey(0)
    kx, kw1, kb1, kw2, kb2 = jax.random.split(key, 5)

    x = jax.random.normal(kx, (N, C, H, W), dtype=jnp.float32)
    # Deterministic parameter init (HWIO layout for the kernel).
    w1 = 0.1 * jax.random.normal(kw1, (3, 3, C, C), dtype=jnp.float32)
    b1 = 0.1 * jax.random.normal(kb1, (C,), dtype=jnp.float32)
    w2 = 0.1 * jax.random.normal(kw2, (3, 3, C, C), dtype=jnp.float32)
    b2 = 0.1 * jax.random.normal(kb2, (C,), dtype=jnp.float32)

    out = residual_block(x, w1, b1, w2, b2)
    jax.block_until_ready(out)

    ref = _reference_forward(x, w1, b1, w2, b2)
    assert out.shape == (N, C, H, W)
    assert jnp.allclose(out, ref, atol=1e-4, rtol=1e-4), "mismatch vs reference"

    print("KERNEL_OK")
</pallas_src>

<mosaic_0001>
module attributes {stable_mosaic.version = 11 : i64} {
  func.func @_residual_block_kernel(%arg0: i32, %arg1: memref<1x4x256xf32, #tpu.memory_space<vmem>>, %arg2: memref<9x256xf32, #tpu.memory_space<vmem>>, %arg3: memref<4x36xf32, #tpu.memory_space<vmem>>, %arg4: memref<4x1xf32, #tpu.memory_space<vmem>>, %arg5: memref<4x36xf32, #tpu.memory_space<vmem>>, %arg6: memref<4x1xf32, #tpu.memory_space<vmem>>, %arg7: memref<1x4x256xf32, #tpu.memory_space<vmem>>) attributes {dimension_semantics = [#tpu.dimension_semantics<parallel>], iteration_bounds = array<i64: 2>, scalar_prefetch = 0 : i64, scratch_operands = 0 : i64, tpu.core_type = #tpu.core_type<tc>, window_params = [{transform_indices = @transform_0, window_bounds = array<i64: 1, 4, 256>}, {pipeline_mode = #tpu.pipeline_mode<synchronous>, transform_indices = @transform_1, window_bounds = array<i64: 9, 256>}, {pipeline_mode = #tpu.pipeline_mode<synchronous>, transform_indices = @transform_2, window_bounds = array<i64: 4, 36>}, {pipeline_mode = #tpu.pipeline_mode<synchronous>, transform_indices = @transform_3, window_bounds = array<i64: 4, 1>}, {pipeline_mode = #tpu.pipeline_mode<synchronous>, transform_indices = @transform_4, window_bounds = array<i64: 4, 36>}, {pipeline_mode = #tpu.pipeline_mode<synchronous>, transform_indices = @transform_5, window_bounds = array<i64: 4, 1>}, {transform_indices = @transform_6, window_bounds = array<i64: 1, 4, 256>}]} {
    %c0 = arith.constant 0 : index
    %c0_0 = arith.constant 0 : index
    %c0_1 = arith.constant 0 : index
    %0 = vector.load %arg1[%c0, %c0_0, %c0_1] : memref<1x4x256xf32, #tpu.memory_space<vmem>>, vector<1x4x256xf32>
    %1 = vector.shape_cast %0 : vector<1x4x256xf32> to vector<4x256xf32>
    %c17_i32 = arith.constant 17 : i32
    %2 = tpu.dynamic_rotate %1 by %c17_i32 dim 1 : vector<4x256xf32>, i32 -> vector<4x256xf32>
    %c0_2 = arith.constant 0 : index
    %c0_3 = arith.constant 0 : index
    %3 = vector.load %arg2[%c0_2, %c0_3] : memref<9x256xf32, #tpu.memory_space<vmem>>, vector<1x256xf32>
    %4 = vector.broadcast %3 : vector<1x256xf32> to vector<4x256xf32>
    %5 = arith.mulf %2, %4 : vector<4x256xf32>
    %c16_i32 = arith.constant 16 : i32
    %6 = tpu.dynamic_rotate %1 by %c16_i32 dim 1 : vector<4x256xf32>, i32 -> vector<4x256xf32>
    %c1 = arith.constant 1 : index
    %c0_4 = arith.constant 0 : index
    %7 = vector.load %arg2[%c1, %c0_4] : memref<9x256xf32, #tpu.memory_space<vmem>>, vector<1x256xf32>
    %8 = vector.broadcast %7 : vector<1x256xf32> to vector<4x256xf32>
    %9 = arith.mulf %6, %8 : vector<4x256xf32>
    %c15_i32 = arith.constant 15 : i32
    %10 = tpu.dynamic_rotate %1 by %c15_i32 dim 1 : vector<4x256xf32>, i32 -> vector<4x256xf32>
    %c2 = arith.constant 2 : index
    %c0_5 = arith.constant 0 : index
    %11 = vector.load %arg2[%c2, %c0_5] : memref<9x256xf32, #tpu.memory_space<vmem>>, vector<1x256xf32>
    %12 = vector.broadcast %11 : vector<1x256xf32> to vector<4x256xf32>
    %13 = arith.mulf %10, %12 : vector<4x256xf32>
    %c1_i32 = arith.constant 1 : i32
    %14 = tpu.dynamic_rotate %1 by %c1_i32 dim 1 : vector<4x256xf32>, i32 -> vector<4x256xf32>
    %c3 = arith.constant 3 : index
    %c0_6 = arith.constant 0 : index
    %15 = vector.load %arg2[%c3, %c0_6] : memref<9x256xf32, #tpu.memory_space<vmem>>, vector<1x256xf32>
    %16 = vector.broadcast %15 : vector<1x256xf32> to vector<4x256xf32>
    %17 = arith.mulf %14, %16 : vector<4x256xf32>
    %c255_i32 = arith.constant 255 : i32
    %18 = tpu.dynamic_rotate %1 by %c255_i32 dim 1 : vector<4x256xf32>, i32 -> vector<4x256xf32>
    %c5 = arith.constant 5 : index
    %c0_7 = arith.constant 0 : index
    %19 = vector.load %arg2[%c5, %c0_7] : memref<9x256xf32, #tpu.memory_space<vmem>>, vector<1x256xf32>
    %20 = vector.broadcast %19 : vector<1x256xf32> to vector<4x256xf32>
    %21 = arith.mulf %18, %20 : vector<4x256xf32>
    %c241_i32 = arith.constant 241 : i32
    %22 = tpu.dynamic_rotate %1 by %c241_i32 dim 1 : vector<4x256xf32>, i32 -> vector<4x256xf32>
    %c6 = arith.constant 6 : index
    %c0_8 = arith.constant 0 : index
    %23 = vector.load %arg2[%c6, %c0_8] : memref<9x256xf32, #tpu.memory_space<vmem>>, vector<1x256xf32>
    %24 = vector.broadcast %23 : vector<1x256xf32> to vector<4x256xf32>
    %25 = arith.mulf %22, %24 : vector<4x256xf32>
    %c240_i32 = arith.constant 240 : i32
    %26 = tpu.dynamic_rotate %1 by %c240_i32 dim 1 : vector<4x256xf32>, i32 -> vector<4x256xf32>
    %c7 = arith.constant 7 : index
    %c0_9 = arith.constant 0 : index
    %27 = vector.load %arg2[%c7, %c0_9] : memref<9x256xf32, #tpu.memory_space<vmem>>, vector<1x256xf32>
    %28 = vector.broadcast %27 : vector<1x256xf32> to vector<4x256xf32>
    %29 = arith.mulf %26, %28 : vector<4x256xf32>
    %c239_i32 = arith.constant 239 : i32
    %30 = tpu.dynamic_rotate %1 by %c239_i32 dim 1 : vector<4x256xf32>, i32 -> vector<4x256xf32>
    %c8 = arith.constant 8 : index
    %c0_10 = arith.constant 0 : index
    %31 = vector.load %arg2[%c8, %c0_10] : memref<9x256xf32, #tpu.memory_space<vmem>>, vector<1x256xf32>
    %32 = vector.broadcast %31 : vector<1x256xf32> to vector<4x256xf32>
    %33 = arith.mulf %30, %32 : vector<4x256xf32>
    %c0_11 = arith.constant 0 : index
    %c0_12 = arith.constant 0 : index
    %34 = vector.load %arg4[%c0_11, %c0_12] : memref<4x1xf32, #tpu.memory_space<vmem>>, vector<4x1xf32>
    %cst = arith.constant 0.000000e+00 : f32
    %35 = vector.broadcast %cst : f32 to vector<4x256xf32>
    %36 = vector.broadcast %34 : vector<4x1xf32> to vector<4x256xf32>
    %37 = arith.addf %36, %35 : vector<4x256xf32>
    %c0_13 = arith.constant 0 : index
    %c0_14 = arith.constant 0 : index
    %38 = vector.load %arg3[%c0_13, %c0_14] : memref<4x36xf32, #tpu.memory_space<vmem>>, vector<4x1xf32>
    %39 = vector.extract_strided_slice %5 {offsets = [0, 0], sizes = [1, 256], strides = [1, 1]} : vector<4x256xf32> to vector<1x256xf32>
    %40 = vector.broadcast %38 : vector<4x1xf32> to vector<4x256xf32>
    %41 = vector.broadcast %39 : vector<1x256xf32> to vector<4x256xf32>
    %42 = arith.mulf %40, %41 : vector<4x256xf32>
    %43 = arith.addf %37, %42 : vector<4x256xf32>
    %c0_15 = arith.constant 0 : index
    %c1_16 = arith.constant 1 : index
    %44 = vector.load %arg3[%c0_15, %c1_16] : memref<4x36xf32, #tpu.memory_space<vmem>>, vector<4x1xf32>
    %45 = vector.extract_strided_slice %5 {offsets = [1, 0], sizes = [1, 256], strides = [1, 1]} : vector<4x256xf32> to vector<1x256xf32>
    %46 = vector.broadcast %44 : vector<4x1xf32> to vector<4x256xf32>
    %47 = vector.broadcast %45 : vector<1x256xf32> to vector<4x256xf32>
    %48 = arith.mulf %46, %47 : vector<4x256xf32>
    %49 = arith.addf %43, %48 : vector<4x256xf32>
    %c0_17 = arith.constant 0 : index
    %c2_18 = arith.constant 2 : index
    %50 = vector.load %arg3[%c0_17, %c2_18] : memref<4x36xf32, #tpu.memory_space<vmem>>, vector<4x1xf32>
    %51 = vector.extract_strided_slice %5 {offsets = [2, 0], sizes = [1, 256], strides = [1, 1]} : vector<4x256xf32> to vector<1x256xf32>
    %52 = vector.broadcast %50 : vector<4x1xf32> to vector<4x256xf32>
    %53 = vector.broadcast %51 : vector<1x256xf32> to vector<4x256xf32>
    %54 = arith.mulf %52, %53 : vector<4x256xf32>
    %55 = arith.addf %49, %54 : vector<4x256xf32>
    %c0_19 = arith.constant 0 : index
    %c3_20 = arith.constant 3 : index
    %56 = vector.load %arg3[%c0_19, %c3_20] : memref<4x36xf32, #tpu.memory_space<vmem>>, vector<4x1xf32>
    %57 = vector.extract_strided_slice %5 {offsets = [3, 0], sizes = [1, 256], strides = [1, 1]} : vector<4x256xf32> to vector<1x256xf32>
    %58 = vector.broadcast %56 : vector<4x1xf32> to vector<4x256xf32>
    %59 = vector.broadcast %57 : vector<1x256xf32> to vector<4x256xf32>
    %60 = arith.mulf %58, %59 : vector<4x256xf32>
    %61 = arith.addf %55, %60 : vector<4x256xf32>
    %c0_21 = arith.constant 0 : index
    %c4 = arith.constant 4 : index
    %62 = vector.load %arg3[%c0_21, %c4] : memref<4x36xf32, #tpu.memory_space<vmem>>, vector<4x1xf32>
    %63 = vector.extract_strided_slice %9 {offsets = [0, 0], sizes = [1, 256], strides = [1, 1]} : vector<4x256xf32> to vector<1x256xf32>
    %64 = vector.broadcast %62 : vector<4x1xf32> to vector<4x256xf32>
    %65 = vector.broadcast %63 : vector<1x256xf32> to vector<4x256xf32>
    %66 = arith.mulf %64, %65 : vector<4x256xf32>
    %67 = arith.addf %61, %66 : vector<4x256xf32>
    %c0_22 = arith.constant 0 : index
    %c5_23 = arith.constant 5 : index
    %68 = vector.load %arg3[%c0_22, %c5_23] : memref<4x36xf32, #tpu.memory_space<vmem>>, vector<4x1xf32>
    %69 = vector.extract_strided_slice %9 {offsets = [1, 0], sizes = [1, 256], strides = [1, 1]} : vector<4x256xf32> to vector<1x256xf32>
    %70 = vector.broadcast %68 : vector<4x1xf32> to vector<4x256xf32>
    %71 = vector.broadcast %69 : vector<1x256xf32> to vector<4x256xf32>
    %72 = arith.mulf %70, %71 : vector<4x256xf32>
    %73 = arith.addf %67, %72 : vector<4x256xf32>
    %c0_24 = arith.constant 0 : index
    %c6_25 = arith.constant 6 : index
    %74 = vector.load %arg3[%c0_24, %c6_25] : memref<4x36xf32, #tpu.memory_space<vmem>>, vector<4x1xf32>
    %75 = vector.extract_strided_slice %9 {offsets = [2, 0], sizes = [1, 256], strides = [1, 1]} : vector<4x256xf32> to vector<1x256xf32>
    %76 = vector.broadcast %74 : vector<4x1xf32> to vector<4x256xf32>
    %77 = vector.broadcast %75 : vector<1x256xf32> to vector<4x256xf32>
    %78 = arith.mulf %76, %77 : vector<4x256xf32>
    %79 = arith.addf %73, %78 : vector<4x256xf32>
    %c0_26 = arith.constant 0 : index
    %c7_27 = arith.constant 7 : index
    %80 = vector.load %arg3[%c0_26, %c7_27] : memref<4x36xf32, #tpu.memory_space<vmem>>, vector<4x1xf32>
    %81 = vector.extract_strided_slice %9 {offsets = [3, 0], sizes = [1, 256], strides = [1, 1]} : vector<4x256xf32> to vector<1x256xf32>
    %82 = vector.broadcast %80 : vector<4x1xf32> to vector<4x256xf32>
    %83 = vector.broadcast %81 : vector<1x256xf32> to vector<4x256xf32>
    %84 = arith.mulf %82, %83 : vector<4x256xf32>
    %85 = arith.addf %79, %84 : vector<4x256xf32>
    %c0_28 = arith.constant 0 : index
    %c8_29 = arith.constant 8 : index
    %86 = vector.load %arg3[%c0_28, %c8_29] : memref<4x36xf32, #tpu.memory_space<vmem>>, vector<4x1xf32>
    %87 = vector.extract_strided_slice %13 {offsets = [0, 0], sizes = [1, 256], strides = [1, 1]} : vector<4x256xf32> to vector<1x256xf32>
    %88 = vector.broadcast %86 : vector<4x1xf32> to vector<4x256xf32>
    %89 = vector.broadcast %87 : vector<1x256xf32> to vector<4x256xf32>
    %90 = arith.mulf %88, %89 : vector<4x256xf32>
    %91 = arith.addf %85, %90 : vector<4x256xf32>
    %c0_30 = arith.constant 0 : index
    %c9 = arith.constant 9 : index
    %92 = vector.load %arg3[%c0_30, %c9] : memref<4x36xf32, #tpu.memory_space<vmem>>, vector<4x1xf32>
    %93 = vector.extract_strided_slice %13 {offsets = [1, 0], sizes = [1, 256], strides = [1, 1]} : vector<4x256xf32> to vector<1x256xf32>
    %94 = vector.broadcast %92 : vector<4x1xf32> to vector<4x256xf32>
    %95 = vector.broadcast %93 : vector<1x256xf32> to vector<4x256xf32>
    %96 = arith.mulf %94, %95 : vector<4x256xf32>
    %97 = arith.addf %91, %96 : vector<4x256xf32>
    %c0_31 = arith.constant 0 : index
    %c10 = arith.constant 10 : index
    %98 = vector.load %arg3[%c0_31, %c10] : memref<4x36xf32, #tpu.memory_space<vmem>>, vector<4x1xf32>
    %99 = vector.extract_strided_slice %13 {offsets = [2, 0], sizes = [1, 256], strides = [1, 1]} : vector<4x256xf32> to vector<1x256xf32>
    %100 = vector.broadcast %98 : vector<4x1xf32> to vector<4x256xf32>
    %101 = vector.broadcast %99 : vector<1x256xf32> to vector<4x256xf32>
    %102 = arith.mulf %100, %101 : vector<4x256xf32>
    %103 = arith.addf %97, %102 : vector<4x256xf32>
    %c0_32 = arith.constant 0 : index
    %c11 = arith.constant 11 : index
    %104 = vector.load %arg3[%c0_32, %c11] : memref<4x36xf32, #tpu.memory_space<vmem>>, vector<4x1xf32>
    %105 = vector.extract_strided_slice %13 {offsets = [3, 0], sizes = [1, 256], strides = [1, 1]} : vector<4x256xf32> to vector<1x256xf32>
    %106 = vector.broadcast %104 : vector<4x1xf32> to vector<4x256xf32>
    %107 = vector.broadcast %105 : vector<1x256xf32> to vector<4x256xf32>
    %108 = arith.mulf %106, %107 : vector<4x256xf32>
    %109 = arith.addf %103, %108 : vector<4x256xf32>
    %c0_33 = arith.constant 0 : index
    %c12 = arith.constant 12 : index
    %110 = vector.load %arg3[%c0_33, %c12] : memref<4x36xf32, #tpu.memory_space<vmem>>, vector<4x1xf32>
    %111 = vector.extract_strided_slice %17 {offsets = [0, 0], sizes = [1, 256], strides = [1, 1]} : vector<4x256xf32> to vector<1x256xf32>
    %112 = vector.broadcast %110 : vector<4x1xf32> to vector<4x256xf32>
    %113 = vector.broadcast %111 : vector<1x256xf32> to vector<4x256xf32>
    %114 = arith.mulf %112, %113 : vector<4x256xf32>
    %115 = arith.addf %109, %114 : vector<4x256xf32>
    %c0_34 = arith.constant 0 : index
    %c13 = arith.constant 13 : index
    %116 = vector.load %arg3[%c0_34, %c13] : memref<4x36xf32, #tpu.memory_space<vmem>>, vector<4x1xf32>
    %117 = vector.extract_strided_slice %17 {offsets = [1, 0], sizes = [1, 256], strides = [1, 1]} : vector<4x256xf32> to vector<1x256xf32>
    %118 = vector.broadcast %116 : vector<4x1xf32> to vector<4x256xf32>
    %119 = vector.broadcast %117 : vector<1x256xf32> to vector<4x256xf32>
    %120 = arith.mulf %118, %119 : vector<4x256xf32>
    %121 = arith.addf %115, %120 : vector<4x256xf32>
    %c0_35 = arith.constant 0 : index
    %c14 = arith.constant 14 : index
    %122 = vector.load %arg3[%c0_35, %c14] : memref<4x36xf32, #tpu.memory_space<vmem>>, vector<4x1xf32>
    %123 = vector.extract_strided_slice %17 {offsets = [2, 0], sizes = [1, 256], strides = [1, 1]} : vector<4x256xf32> to vector<1x256xf32>
    %124 = vector.broadcast %122 : vector<4x1xf32> to vector<4x256xf32>
    %125 = vector.broadcast %123 : vector<1x256xf32> to vector<4x256xf32>
    %126 = arith.mulf %124, %125 : vector<4x256xf32>
    %127 = arith.addf %121, %126 : vector<4x256xf32>
    %c0_36 = arith.constant 0 : index
    %c15 = arith.constant 15 : index
    %128 = vector.load %arg3[%c0_36, %c15] : memref<4x36xf32, #tpu.memory_space<vmem>>, vector<4x1xf32>
    %129 = vector.extract_strided_slice %17 {offsets = [3, 0], sizes = [1, 256], strides = [1, 1]} : vector<4x256xf32> to vector<1x256xf32>
    %130 = vector.broadcast %128 : vector<4x1xf32> to vector<4x256xf32>
    %131 = vector.broadcast %129 : vector<1x256xf32> to vector<4x256xf32>
    %132 = arith.mulf %130, %131 : vector<4x256xf32>
    %133 = arith.addf %127, %132 : vector<4x256xf32>
    %c0_37 = arith.constant 0 : index
    %c16 = arith.constant 16 : index
    %134 = vector.load %arg3[%c0_37, %c16] : memref<4x36xf32, #tpu.memory_space<vmem>>, vector<4x1xf32>
    %135 = vector.extract_strided_slice %1 {offsets = [0, 0], sizes = [1, 256], strides = [1, 1]} : vector<4x256xf32> to vector<1x256xf32>
    %136 = vector.broadcast %134 : vector<4x1xf32> to vector<4x256xf32>
    %137 = vector.broadcast %135 : vector<1x256xf32> to vector<4x256xf32>
    %138 = arith.mulf %136, %137 : vector<4x256xf32>
    %139 = arith.addf %133, %138 : vector<4x256xf32>
    %c0_38 = arith.constant 0 : index
    %c17 = arith.constant 17 : index
    %140 = vector.load %arg3[%c0_38, %c17] : memref<4x36xf32, #tpu.memory_space<vmem>>, vector<4x1xf32>
    %141 = vector.extract_strided_slice %1 {offsets = [1, 0], sizes = [1, 256], strides = [1, 1]} : vector<4x256xf32> to vector<1x256xf32>
    %142 = vector.broadcast %140 : vector<4x1xf32> to vector<4x256xf32>
    %143 = vector.broadcast %141 : vector<1x256xf32> to vector<4x256xf32>
    %144 = arith.mulf %142, %143 : vector<4x256xf32>
    %145 = arith.addf %139, %144 : vector<4x256xf32>
    %c0_39 = arith.constant 0 : index
    %c18 = arith.constant 18 : index
    %146 = vector.load %arg3[%c0_39, %c18] : memref<4x36xf32, #tpu.memory_space<vmem>>, vector<4x1xf32>
    %147 = vector.extract_strided_slice %1 {offsets = [2, 0], sizes = [1, 256], strides = [1, 1]} : vector<4x256xf32> to vector<1x256xf32>
    %148 = vector.broadcast %146 : vector<4x1xf32> to vector<4x256xf32>
    %149 = vector.broadcast %147 : vector<1x256xf32> to vector<4x256xf32>
    %150 = arith.mulf %148, %149 : vector<4x256xf32>
    %151 = arith.addf %145, %150 : vector<4x256xf32>
    %c0_40 = arith.constant 0 : index
    %c19 = arith.constant 19 : index
    %152 = vector.load %arg3[%c0_40, %c19] : memref<4x36xf32, #tpu.memory_space<vmem>>, vector<4x1xf32>
    %153 = vector.extract_strided_slice %1 {offsets = [3, 0], sizes = [1, 256], strides = [1, 1]} : vector<4x256xf32> to vector<1x256xf32>
    %154 = vector.broadcast %152 : vector<4x1xf32> to vector<4x256xf32>
    %155 = vector.broadcast %153 : vector<1x256xf32> to vector<4x256xf32>
    %156 = arith.mulf %154, %155 : vector<4x256xf32>
    %157 = arith.addf %151, %156 : vector<4x256xf32>
    %c0_41 = arith.constant 0 : index
    %c20 = arith.constant 20 : index
    %158 = vector.load %arg3[%c0_41, %c20] : memref<4x36xf32, #tpu.memory_space<vmem>>, vector<4x1xf32>
    %159 = vector.extract_strided_slice %21 {offsets = [0, 0], sizes = [1, 256], strides = [1, 1]} : vector<4x256xf32> to vector<1x256xf32>
    %160 = vector.broadcast %158 : vector<4x1xf32> to vector<4x256xf32>
    %161 = vector.broadcast %159 : vector<1x256xf32> to vector<4x256xf32>
    %162 = arith.mulf %160, %161 : vector<4x256xf32>
    %163 = arith.addf %157, %162 : vector<4x256xf32>
    %c0_42 = arith.constant 0 : index
    %c21 = arith.constant 21 : index
    %164 = vector.load %arg3[%c0_42, %c21] : memref<4x36xf32, #tpu.memory_space<vmem>>, vector<4x1xf32>
    %165 = vector.extract_strided_slice %21 {offsets = [1, 0], sizes = [1, 256], strides = [1, 1]} : vector<4x256xf32> to vector<1x256xf32>
    %166 = vector.broadcast %164 : vector<4x1xf32> to vector<4x256xf32>
    %167 = vector.broadcast %165 : vector<1x256xf32> to vector<4x256xf32>
    %168 = arith.mulf %166, %167 : vector<4x256xf32>
    %169 = arith.addf %163, %168 : vector<4x256xf32>
    %c0_43 = arith.constant 0 : index
    %c22 = arith.constant 22 : index
    %170 = vector.load %arg3[%c0_43, %c22] : memref<4x36xf32, #tpu.memory_space<vmem>>, vector<4x1xf32>
    %171 = vector.extract_strided_slice %21 {offsets = [2, 0], sizes = [1, 256], strides = [1, 1]} : vector<4x256xf32> to vector<1x256xf32>
    %172 = vector.broadcast %170 : vector<4x1xf32> to vector<4x256xf32>
    %173 = vector.broadcast %171 : vector<1x256xf32> to vector<4x256xf32>
    %174 = arith.mulf %172, %173 : vector<4x256xf32>
    %175 = arith.addf %169, %174 : vector<4x256xf32>
    %c0_44 = arith.constant 0 : index
    %c23 = arith.constant 23 : index
    %176 = vector.load %arg3[%c0_44, %c23] : memref<4x36xf32, #tpu.memory_space<vmem>>, vector<4x1xf32>
    %177 = vector.extract_strided_slice %21 {offsets = [3, 0], sizes = [1, 256], strides = [1, 1]} : vector<4x256xf32> to vector<1x256xf32>
    %178 = vector.broadcast %176 : vector<4x1xf32> to vector<4x256xf32>
    %179 = vector.broadcast %177 : vector<1x256xf32> to vector<4x256xf32>
    %180 = arith.mulf %178, %179 : vector<4x256xf32>
    %181 = arith.addf %175, %180 : vector<4x256xf32>
    %c0_45 = arith.constant 0 : index
    %c24 = arith.constant 24 : index
    %182 = vector.load %arg3[%c0_45, %c24] : memref<4x36xf32, #tpu.memory_space<vmem>>, vector<4x1xf32>
    %183 = vector.extract_strided_slice %25 {offsets = [0, 0], sizes = [1, 256], strides = [1, 1]} : vector<4x256xf32> to vector<1x256xf32>
    %184 = vector.broadcast %182 : vector<4x1xf32> to vector<4x256xf32>
    %185 = vector.broadcast %183 : vector<1x256xf32> to vector<4x256xf32>
    %186 = arith.mulf %184, %185 : vector<4x256xf32>
    %187 = arith.addf %181, %186 : vector<4x256xf32>
    %c0_46 = arith.constant 0 : index
    %c25 = arith.constant 25 : index
    %188 = vector.load %arg3[%c0_46, %c25] : memref<4x36xf32, #tpu.memory_space<vmem>>, vector<4x1xf32>
    %189 = vector.extract_strided_slice %25 {offsets = [1, 0], sizes = [1, 256], strides = [1, 1]} : vector<4x256xf32> to vector<1x256xf32>
    %190 = vector.broadcast %188 : vector<4x1xf32> to vector<4x256xf32>
    %191 = vector.broadcast %189 : vector<1x256xf32> to vector<4x256xf32>
    %192 = arith.mulf %190, %191 : vector<4x256xf32>
    %193 = arith.addf %187, %192 : vector<4x256xf32>
    %c0_47 = arith.constant 0 : index
    %c26 = arith.constant 26 : index
    %194 = vector.load %arg3[%c0_47, %c26] : memref<4x36xf32, #tpu.memory_space<vmem>>, vector<4x1xf32>
    %195 = vector.extract_strided_slice %25 {offsets = [2, 0], sizes = [1, 256], strides = [1, 1]} : vector<4x256xf32> to vector<1x256xf32>
    %196 = vector.broadcast %194 : vector<4x1xf32> to vector<4x256xf32>
    %197 = vector.broadcast %195 : vector<1x256xf32> to vector<4x256xf32>
    %198 = arith.mulf %196, %197 : vector<4x256xf32>
    %199 = arith.addf %193, %198 : vector<4x256xf32>
    %c0_48 = arith.constant 0 : index
    %c27 = arith.constant 27 : index
    %200 = vector.load %arg3[%c0_48, %c27] : memref<4x36xf32, #tpu.memory_space<vmem>>, vector<4x1xf32>
    %201 = vector.extract_strided_slice %25 {offsets = [3, 0], sizes = [1, 256], strides = [1, 1]} : vector<4x256xf32> to vector<1x256xf32>
    %202 = vector.broadcast %200 : vector<4x1xf32> to vector<4x256xf32>
    %203 = vector.broadcast %201 : vector<1x256xf32> to vector<4x256xf32>
    %204 = arith.mulf %202, %203 : vector<4x256xf32>
    %205 = arith.addf %199, %204 : vector<4x256xf32>
    %c0_49 = arith.constant 0 : index
    %c28 = arith.constant 28 : index
    %206 = vector.load %arg3[%c0_49, %c28] : memref<4x36xf32, #tpu.memory_space<vmem>>, vector<4x1xf32>
    %207 = vector.extract_strided_slice %29 {offsets = [0, 0], sizes = [1, 256], strides = [1, 1]} : vector<4x256xf32> to vector<1x256xf32>
    %208 = vector.broadcast %206 : vector<4x1xf32> to vector<4x256xf32>
    %209 = vector.broadcast %207 : vector<1x256xf32> to vector<4x256xf32>
    %210 = arith.mulf %208, %209 : vector<4x256xf32>
    %211 = arith.addf %205, %210 : vector<4x256xf32>
    %c0_50 = arith.constant 0 : index
    %c29 = arith.constant 29 : index
    %212 = vector.load %arg3[%c0_50, %c29] : memref<4x36xf32, #tpu.memory_space<vmem>>, vector<4x1xf32>
    %213 = vector.extract_strided_slice %29 {offsets = [1, 0], sizes = [1, 256], strides = [1, 1]} : vector<4x256xf32> to vector<1x256xf32>
    %214 = vector.broadcast %212 : vector<4x1xf32> to vector<4x256xf32>
    %215 = vector.broadcast %213 : vector<1x256xf32> to vector<4x256xf32>
    %216 = arith.mulf %214, %215 : vector<4x256xf32>
    %217 = arith.addf %211, %216 : vector<4x256xf32>
    %c0_51 = arith.constant 0 : index
    %c30 = arith.constant 30 : index
    %218 = vector.load %arg3[%c0_51, %c30] : memref<4x36xf32, #tpu.memory_space<vmem>>, vector<4x1xf32>
    %219 = vector.extract_strided_slice %29 {offsets = [2, 0], sizes = [1, 256], strides = [1, 1]} : vector<4x256xf32> to vector<1x256xf32>
    %220 = vector.broadcast %218 : vector<4x1xf32> to vector<4x256xf32>
    %221 = vector.broadcast %219 : vector<1x256xf32> to vector<4x256xf32>
    %222 = arith.mulf %220, %221 : vector<4x256xf32>
    %223 = arith.addf %217, %222 : vector<4x256xf32>
    %c0_52 = arith.constant 0 : index
    %c31 = arith.constant 31 : index
    %224 = vector.load %arg3[%c0_52, %c31] : memref<4x36xf32, #tpu.memory_space<vmem>>, vector<4x1xf32>
    %225 = vector.extract_strided_slice %29 {offsets = [3, 0], sizes = [1, 256], strides = [1, 1]} : vector<4x256xf32> to vector<1x256xf32>
    %226 = vector.broadcast %224 : vector<4x1xf32> to vector<4x256xf32>
    %227 = vector.broadcast %225 : vector<1x256xf32> to vector<4x256xf32>
    %228 = arith.mulf %226, %227 : vector<4x256xf32>
    %229 = arith.addf %223, %228 : vector<4x256xf32>
    %c0_53 = arith.constant 0 : index
    %c32 = arith.constant 32 : index
    %230 = vector.load %arg3[%c0_53, %c32] : memref<4x36xf32, #tpu.memory_space<vmem>>, vector<4x1xf32>
    %231 = vector.extract_strided_slice %33 {offsets = [0, 0], sizes = [1, 256], strides = [1, 1]} : vector<4x256xf32> to vector<1x256xf32>
    %232 = vector.broadcast %230 : vector<4x1xf32> to vector<4x256xf32>
    %233 = vector.broadcast %231 : vector<1x256xf32> to vector<4x256xf32>
    %234 = arith.mulf %232, %233 : vector<4x256xf32>
    %235 = arith.addf %229, %234 : vector<4x256xf32>
    %c0_54 = arith.constant 0 : index
    %c33 = arith.constant 33 : index
    %236 = vector.load %arg3[%c0_54, %c33] : memref<4x36xf32, #tpu.memory_space<vmem>>, vector<4x1xf32>
    %237 = vector.extract_strided_slice %33 {offsets = [1, 0], sizes = [1, 256], strides = [1, 1]} : vector<4x256xf32> to vector<1x256xf32>
    %238 = vector.broadcast %236 : vector<4x1xf32> to vector<4x256xf32>
    %239 = vector.broadcast %237 : vector<1x256xf32> to vector<4x256xf32>
    %240 = arith.mulf %238, %239 : vector<4x256xf32>
    %241 = arith.addf %235, %240 : vector<4x256xf32>
    %c0_55 = arith.constant 0 : index
    %c34 = arith.constant 34 : index
    %242 = vector.load %arg3[%c0_55, %c34] : memref<4x36xf32, #tpu.memory_space<vmem>>, vector<4x1xf32>
    %243 = vector.extract_strided_slice %33 {offsets = [2, 0], sizes = [1, 256], strides = [1, 1]} : vector<4x256xf32> to vector<1x256xf32>
    %244 = vector.broadcast %242 : vector<4x1xf32> to vector<4x256xf32>
    %245 = vector.broadcast %243 : vector<1x256xf32> to vector<4x256xf32>
    %246 = arith.mulf %244, %245 : vector<4x256xf32>
    %247 = arith.addf %241, %246 : vector<4x256xf32>
    %c0_56 = arith.constant 0 : index
    %c35 = arith.constant 35 : index
    %248 = vector.load %arg3[%c0_56, %c35] : memref<4x36xf32, #tpu.memory_space<vmem>>, vector<4x1xf32>
    %249 = vector.extract_strided_slice %33 {offsets = [3, 0], sizes = [1, 256], strides = [1, 1]} : vector<4x256xf32> to vector<1x256xf32>
    %250 = vector.broadcast %248 : vector<4x1xf32> to vector<4x256xf32>
    %251 = vector.broadcast %249 : vector<1x256xf32> to vector<4x256xf32>
    %252 = arith.mulf %250, %251 : vector<4x256xf32>
    %253 = arith.addf %247, %252 : vector<4x256xf32>
    %cst_57 = arith.constant 0.000000e+00 : f32
    %254 = vector.broadcast %cst_57 : f32 to vector<4x256xf32>
    %255 = arith.maximumf %253, %254 : vector<4x256xf32>
    %c17_i32_58 = arith.constant 17 : i32
    %256 = tpu.dynamic_rotate %255 by %c17_i32_58 dim 1 : vector<4x256xf32>, i32 -> vector<4x256xf32>
    %c0_59 = arith.constant 0 : index
    %c0_60 = arith.constant 0 : index
    %257 = vector.load %arg2[%c0_59, %c0_60] : memref<9x256xf32, #tpu.memory_space<vmem>>, vector<1x256xf32>
    %258 = vector.broadcast %257 : vector<1x256xf32> to vector<4x256xf32>
    %259 = arith.mulf %256, %258 : vector<4x256xf32>
    %c16_i32_61 = arith.constant 16 : i32
    %260 = tpu.dynamic_rotate %255 by %c16_i32_61 dim 1 : vector<4x256xf32>, i32 -> vector<4x256xf32>
    %c1_62 = arith.constant 1 : index
    %c0_63 = arith.constant 0 : index
    %261 = vector.load %arg2[%c1_62, %c0_63] : memref<9x256xf32, #tpu.memory_space<vmem>>, vector<1x256xf32>
    %262 = vector.broadcast %261 : vector<1x256xf32> to vector<4x256xf32>
    %263 = arith.mulf %260, %262 : vector<4x256xf32>
    %c15_i32_64 = arith.constant 15 : i32
    %264 = tpu.dynamic_rotate %255 by %c15_i32_64 dim 1 : vector<4x256xf32>, i32 -> vector<4x256xf32>
    %c2_65 = arith.constant 2 : index
    %c0_66 = arith.constant 0 : index
    %265 = vector.load %arg2[%c2_65, %c0_66] : memref<9x256xf32, #tpu.memory_space<vmem>>, vector<1x256xf32>
    %266 = vector.broadcast %265 : vector<1x256xf32> to vector<4x256xf32>
    %267 = arith.mulf %264, %266 : vector<4x256xf32>
    %c1_i32_67 = arith.constant 1 : i32
    %268 = tpu.dynamic_rotate %255 by %c1_i32_67 dim 1 : vector<4x256xf32>, i32 -> vector<4x256xf32>
    %c3_68 = arith.constant 3 : index
    %c0_69 = arith.constant 0 : index
    %269 = vector.load %arg2[%c3_68, %c0_69] : memref<9x256xf32, #tpu.memory_space<vmem>>, vector<1x256xf32>
    %270 = vector.broadcast %269 : vector<1x256xf32> to vector<4x256xf32>
    %271 = arith.mulf %268, %270 : vector<4x256xf32>
    %c255_i32_70 = arith.constant 255 : i32
    %272 = tpu.dynamic_rotate %255 by %c255_i32_70 dim 1 : vector<4x256xf32>, i32 -> vector<4x256xf32>
    %c5_71 = arith.constant 5 : index
    %c0_72 = arith.constant 0 : index
    %273 = vector.load %arg2[%c5_71, %c0_72] : memref<9x256xf32, #tpu.memory_space<vmem>>, vector<1x256xf32>
    %274 = vector.broadcast %273 : vector<1x256xf32> to vector<4x256xf32>
    %275 = arith.mulf %272, %274 : vector<4x256xf32>
    %c241_i32_73 = arith.constant 241 : i32
    %276 = tpu.dynamic_rotate %255 by %c241_i32_73 dim 1 : vector<4x256xf32>, i32 -> vector<4x256xf32>
    %c6_74 = arith.constant 6 : index
    %c0_75 = arith.constant 0 : index
    %277 = vector.load %arg2[%c6_74, %c0_75] : memref<9x256xf32, #tpu.memory_space<vmem>>, vector<1x256xf32>
    %278 = vector.broadcast %277 : vector<1x256xf32> to vector<4x256xf32>
    %279 = arith.mulf %276, %278 : vector<4x256xf32>
    %c240_i32_76 = arith.constant 240 : i32
    %280 = tpu.dynamic_rotate %255 by %c240_i32_76 dim 1 : vector<4x256xf32>, i32 -> vector<4x256xf32>
    %c7_77 = arith.constant 7 : index
    %c0_78 = arith.constant 0 : index
    %281 = vector.load %arg2[%c7_77, %c0_78] : memref<9x256xf32, #tpu.memory_space<vmem>>, vector<1x256xf32>
    %282 = vector.broadcast %281 : vector<1x256xf32> to vector<4x256xf32>
    %283 = arith.mulf %280, %282 : vector<4x256xf32>
    %c239_i32_79 = arith.constant 239 : i32
    %284 = tpu.dynamic_rotate %255 by %c239_i32_79 dim 1 : vector<4x256xf32>, i32 -> vector<4x256xf32>
    %c8_80 = arith.constant 8 : index
    %c0_81 = arith.constant 0 : index
    %285 = vector.load %arg2[%c8_80, %c0_81] : memref<9x256xf32, #tpu.memory_space<vmem>>, vector<1x256xf32>
    %286 = vector.broadcast %285 : vector<1x256xf32> to vector<4x256xf32>
    %287 = arith.mulf %284, %286 : vector<4x256xf32>
    %c0_82 = arith.constant 0 : index
    %c0_83 = arith.constant 0 : index
    %288 = vector.load %arg6[%c0_82, %c0_83] : memref<4x1xf32, #tpu.memory_space<vmem>>, vector<4x1xf32>
    %cst_84 = arith.constant 0.000000e+00 : f32
    %289 = vector.broadcast %cst_84 : f32 to vector<4x256xf32>
    %290 = vector.broadcast %288 : vector<4x1xf32> to vector<4x256xf32>
    %291 = arith.addf %290, %289 : vector<4x256xf32>
    %c0_85 = arith.constant 0 : index
    %c0_86 = arith.constant 0 : index
    %292 = vector.load %arg5[%c0_85, %c0_86] : memref<4x36xf32, #tpu.memory_space<vmem>>, vector<4x1xf32>
    %293 = vector.extract_strided_slice %259 {offsets = [0, 0], sizes = [1, 256], strides = [1, 1]} : vector<4x256xf32> to vector<1x256xf32>
    %294 = vector.broadcast %292 : vector<4x1xf32> to vector<4x256xf32>
    %295 = vector.broadcast %293 : vector<1x256xf32> to vector<4x256xf32>
    %296 = arith.mulf %294, %295 : vector<4x256xf32>
    %297 = arith.addf %291, %296 : vector<4x256xf32>
    %c0_87 = arith.constant 0 : index
    %c1_88 = arith.constant 1 : index
    %298 = vector.load %arg5[%c0_87, %c1_88] : memref<4x36xf32, #tpu.memory_space<vmem>>, vector<4x1xf32>
    %299 = vector.extract_strided_slice %259 {offsets = [1, 0], sizes = [1, 256], strides = [1, 1]} : vector<4x256xf32> to vector<1x256xf32>
    %300 = vector.broadcast %298 : vector<4x1xf32> to vector<4x256xf32>
    %301 = vector.broadcast %299 : vector<1x256xf32> to vector<4x256xf32>
    %302 = arith.mulf %300, %301 : vector<4x256xf32>
    %303 = arith.addf %297, %302 : vector<4x256xf32>
    %c0_89 = arith.constant 0 : index
    %c2_90 = arith.constant 2 : index
    %304 = vector.load %arg5[%c0_89, %c2_90] : memref<4x36xf32, #tpu.memory_space<vmem>>, vector<4x1xf32>
    %305 = vector.extract_strided_slice %259 {offsets = [2, 0], sizes = [1, 256], strides = [1, 1]} : vector<4x256xf32> to vector<1x256xf32>
    %306 = vector.broadcast %304 : vector<4x1xf32> to vector<4x256xf32>
    %307 = vector.broadcast %305 : vector<1x256xf32> to vector<4x256xf32>
    %308 = arith.mulf %306, %307 : vector<4x256xf32>
    %309 = arith.addf %303, %308 : vector<4x256xf32>
    %c0_91 = arith.constant 0 : index
    %c3_92 = arith.constant 3 : index
    %310 = vector.load %arg5[%c0_91, %c3_92] : memref<4x36xf32, #tpu.memory_space<vmem>>, vector<4x1xf32>
    %311 = vector.extract_strided_slice %259 {offsets = [3, 0], sizes = [1, 256], strides = [1, 1]} : vector<4x256xf32> to vector<1x256xf32>
    %312 = vector.broadcast %310 : vector<4x1xf32> to vector<4x256xf32>
    %313 = vector.broadcast %311 : vector<1x256xf32> to vector<4x256xf32>
    %314 = arith.mulf %312, %313 : vector<4x256xf32>
    %315 = arith.addf %309, %314 : vector<4x256xf32>
    %c0_93 = arith.constant 0 : index
    %c4_94 = arith.constant 4 : index
    %316 = vector.load %arg5[%c0_93, %c4_94] : memref<4x36xf32, #tpu.memory_space<vmem>>, vector<4x1xf32>
    %317 = vector.extract_strided_slice %263 {offsets = [0, 0], sizes = [1, 256], strides = [1, 1]} : vector<4x256xf32> to vector<1x256xf32>
    %318 = vector.broadcast %316 : vector<4x1xf32> to vector<4x256xf32>
    %319 = vector.broadcast %317 : vector<1x256xf32> to vector<4x256xf32>
    %320 = arith.mulf %318, %319 : vector<4x256xf32>
    %321 = arith.addf %315, %320 : vector<4x256xf32>
    %c0_95 = arith.constant 0 : index
    %c5_96 = arith.constant 5 : index
    %322 = vector.load %arg5[%c0_95, %c5_96] : memref<4x36xf32, #tpu.memory_space<vmem>>, vector<4x1xf32>
    %323 = vector.extract_strided_slice %263 {offsets = [1, 0], sizes = [1, 256], strides = [1, 1]} : vector<4x256xf32> to vector<1x256xf32>
    %324 = vector.broadcast %322 : vector<4x1xf32> to vector<4x256xf32>
    %325 = vector.broadcast %323 : vector<1x256xf32> to vector<4x256xf32>
    %326 = arith.mulf %324, %325 : vector<4x256xf32>
    %327 = arith.addf %321, %326 : vector<4x256xf32>
    %c0_97 = arith.constant 0 : index
    %c6_98 = arith.constant 6 : index
    %328 = vector.load %arg5[%c0_97, %c6_98] : memref<4x36xf32, #tpu.memory_space<vmem>>, vector<4x1xf32>
    %329 = vector.extract_strided_slice %263 {offsets = [2, 0], sizes = [1, 256], strides = [1, 1]} : vector<4x256xf32> to vector<1x256xf32>
    %330 = vector.broadcast %328 : vector<4x1xf32> to vector<4x256xf32>
    %331 = vector.broadcast %329 : vector<1x256xf32> to vector<4x256xf32>
    %332 = arith.mulf %330, %331 : vector<4x256xf32>
    %333 = arith.addf %327, %332 : vector<4x256xf32>
    %c0_99 = arith.constant 0 : index
    %c7_100 = arith.constant 7 : index
    %334 = vector.load %arg5[%c0_99, %c7_100] : memref<4x36xf32, #tpu.memory_space<vmem>>, vector<4x1xf32>
    %335 = vector.extract_strided_slice %263 {offsets = [3, 0], sizes = [1, 256], strides = [1, 1]} : vector<4x256xf32> to vector<1x256xf32>
    %336 = vector.broadcast %334 : vector<4x1xf32> to vector<4x256xf32>
    %337 = vector.broadcast %335 : vector<1x256xf32> to vector<4x256xf32>
    %338 = arith.mulf %336, %337 : vector<4x256xf32>
    %339 = arith.addf %333, %338 : vector<4x256xf32>
    %c0_101 = arith.constant 0 : index
    %c8_102 = arith.constant 8 : index
    %340 = vector.load %arg5[%c0_101, %c8_102] : memref<4x36xf32, #tpu.memory_space<vmem>>, vector<4x1xf32>
    %341 = vector.extract_strided_slice %267 {offsets = [0, 0], sizes = [1, 256], strides = [1, 1]} : vector<4x256xf32> to vector<1x256xf32>
    %342 = vector.broadcast %340 : vector<4x1xf32> to vector<4x256xf32>
    %343 = vector.broadcast %341 : vector<1x256xf32> to vector<4x256xf32>
    %344 = arith.mulf %342, %343 : vector<4x256xf32>
    %345 = arith.addf %339, %344 : vector<4x256xf32>
    %c0_103 = arith.constant 0 : index
    %c9_104 = arith.constant 9 : index
    %346 = vector.load %arg5[%c0_103, %c9_104] : memref<4x36xf32, #tpu.memory_space<vmem>>, vector<4x1xf32>
    %347 = vector.extract_strided_slice %267 {offsets = [1, 0], sizes = [1, 256], strides = [1, 1]} : vector<4x256xf32> to vector<1x256xf32>
    %348 = vector.broadcast %346 : vector<4x1xf32> to vector<4x256xf32>
    %349 = vector.broadcast %347 : vector<1x256xf32> to vector<4x256xf32>
    %350 = arith.mulf %348, %349 : vector<4x256xf32>
    %351 = arith.addf %345, %350 : vector<4x256xf32>
    %c0_105 = arith.constant 0 : index
    %c10_106 = arith.constant 10 : index
    %352 = vector.load %arg5[%c0_105, %c10_106] : memref<4x36xf32, #tpu.memory_space<vmem>>, vector<4x1xf32>
    %353 = vector.extract_strided_slice %267 {offsets = [2, 0], sizes = [1, 256], strides = [1, 1]} : vector<4x256xf32> to vector<1x256xf32>
    %354 = vector.broadcast %352 : vector<4x1xf32> to vector<4x256xf32>
    %355 = vector.broadcast %353 : vector<1x256xf32> to vector<4x256xf32>
    %356 = arith.mulf %354, %355 : vector<4x256xf32>
    %357 = arith.addf %351, %356 : vector<4x256xf32>
    %c0_107 = arith.constant 0 : index
    %c11_108 = arith.constant 11 : index
    %358 = vector.load %arg5[%c0_107, %c11_108] : memref<4x36xf32, #tpu.memory_space<vmem>>, vector<4x1xf32>
    %359 = vector.extract_strided_slice %267 {offsets = [3, 0], sizes = [1, 256], strides = [1, 1]} : vector<4x256xf32> to vector<1x256xf32>
    %360 = vector.broadcast %358 : vector<4x1xf32> to vector<4x256xf32>
    %361 = vector.broadcast %359 : vector<1x256xf32> to vector<4x256xf32>
    %362 = arith.mulf %360, %361 : vector<4x256xf32>
    %363 = arith.addf %357, %362 : vector<4x256xf32>
    %c0_109 = arith.constant 0 : index
    %c12_110 = arith.constant 12 : index
    %364 = vector.load %arg5[%c0_109, %c12_110] : memref<4x36xf32, #tpu.memory_space<vmem>>, vector<4x1xf32>
    %365 = vector.extract_strided_slice %271 {offsets = [0, 0], sizes = [1, 256], strides = [1, 1]} : vector<4x256xf32> to vector<1x256xf32>
    %366 = vector.broadcast %364 : vector<4x1xf32> to vector<4x256xf32>
    %367 = vector.broadcast %365 : vector<1x256xf32> to vector<4x256xf32>
    %368 = arith.mulf %366, %367 : vector<4x256xf32>
    %369 = arith.addf %363, %368 : vector<4x256xf32>
    %c0_111 = arith.constant 0 : index
    %c13_112 = arith.constant 13 : index
    %370 = vector.load %arg5[%c0_111, %c13_112] : memref<4x36xf32, #tpu.memory_space<vmem>>, vector<4x1xf32>
    %371 = vector.extract_strided_slice %271 {offsets = [1, 0], sizes = [1, 256], strides = [1, 1]} : vector<4x256xf32> to vector<1x256xf32>
    %372 = vector.broadcast %370 : vector<4x1xf32> to vector<4x256xf32>
    %373 = vector.broadcast %371 : vector<1x256xf32> to vector<4x256xf32>
    %374 = arith.mulf %372, %373 : vector<4x256xf32>
    %375 = arith.addf %369, %374 : vector<4x256xf32>
    %c0_113 = arith.constant 0 : index
    %c14_114 = arith.constant 14 : index
    %376 = vector.load %arg5[%c0_113, %c14_114] : memref<4x36xf32, #tpu.memory_space<vmem>>, vector<4x1xf32>
    %377 = vector.extract_strided_slice %271 {offsets = [2, 0], sizes = [1, 256], strides = [1, 1]} : vector<4x256xf32> to vector<1x256xf32>
    %378 = vector.broadcast %376 : vector<4x1xf32> to vector<4x256xf32>
    %379 = vector.broadcast %377 : vector<1x256xf32> to vector<4x256xf32>
    %380 = arith.mulf %378, %379 : vector<4x256xf32>
    %381 = arith.addf %375, %380 : vector<4x256xf32>
    %c0_115 = arith.constant 0 : index
    %c15_116 = arith.constant 15 : index
    %382 = vector.load %arg5[%c0_115, %c15_116] : memref<4x36xf32, #tpu.memory_space<vmem>>, vector<4x1xf32>
    %383 = vector.extract_strided_slice %271 {offsets = [3, 0], sizes = [1, 256], strides = [1, 1]} : vector<4x256xf32> to vector<1x256xf32>
    %384 = vector.broadcast %382 : vector<4x1xf32> to vector<4x256xf32>
    %385 = vector.broadcast %383 : vector<1x256xf32> to vector<4x256xf32>
    %386 = arith.mulf %384, %385 : vector<4x256xf32>
    %387 = arith.addf %381, %386 : vector<4x256xf32>
    %c0_117 = arith.constant 0 : index
    %c16_118 = arith.constant 16 : index
    %388 = vector.load %arg5[%c0_117, %c16_118] : memref<4x36xf32, #tpu.memory_space<vmem>>, vector<4x1xf32>
    %389 = vector.extract_strided_slice %255 {offsets = [0, 0], sizes = [1, 256], strides = [1, 1]} : vector<4x256xf32> to vector<1x256xf32>
    %390 = vector.broadcast %388 : vector<4x1xf32> to vector<4x256xf32>
    %391 = vector.broadcast %389 : vector<1x256xf32> to vector<4x256xf32>
    %392 = arith.mulf %390, %391 : vector<4x256xf32>
    %393 = arith.addf %387, %392 : vector<4x256xf32>
    %c0_119 = arith.constant 0 : index
    %c17_120 = arith.constant 17 : index
    %394 = vector.load %arg5[%c0_119, %c17_120] : memref<4x36xf32, #tpu.memory_space<vmem>>, vector<4x1xf32>
    %395 = vector.extract_strided_slice %255 {offsets = [1, 0], sizes = [1, 256], strides = [1, 1]} : vector<4x256xf32> to vector<1x256xf32>
    %396 = vector.broadcast %394 : vector<4x1xf32> to vector<4x256xf32>
    %397 = vector.broadcast %395 : vector<1x256xf32> to vector<4x256xf32>
    %398 = arith.mulf %396, %397 : vector<4x256xf32>
    %399 = arith.addf %393, %398 : vector<4x256xf32>
    %c0_121 = arith.constant 0 : index
    %c18_122 = arith.constant 18 : index
    %400 = vector.load %arg5[%c0_121, %c18_122] : memref<4x36xf32, #tpu.memory_space<vmem>>, vector<4x1xf32>
    %401 = vector.extract_strided_slice %255 {offsets = [2, 0], sizes = [1, 256], strides = [1, 1]} : vector<4x256xf32> to vector<1x256xf32>
    %402 = vector.broadcast %400 : vector<4x1xf32> to vector<4x256xf32>
    %403 = vector.broadcast %401 : vector<1x256xf32> to vector<4x256xf32>
    %404 = arith.mulf %402, %403 : vector<4x256xf32>
    %405 = arith.addf %399, %404 : vector<4x256xf32>
    %c0_123 = arith.constant 0 : index
    %c19_124 = arith.constant 19 : index
    %406 = vector.load %arg5[%c0_123, %c19_124] : memref<4x36xf32, #tpu.memory_space<vmem>>, vector<4x1xf32>
    %407 = vector.extract_strided_slice %255 {offsets = [3, 0], sizes = [1, 256], strides = [1, 1]} : vector<4x256xf32> to vector<1x256xf32>
    %408 = vector.broadcast %406 : vector<4x1xf32> to vector<4x256xf32>
    %409 = vector.broadcast %407 : vector<1x256xf32> to vector<4x256xf32>
    %410 = arith.mulf %408, %409 : vector<4x256xf32>
    %411 = arith.addf %405, %410 : vector<4x256xf32>
    %c0_125 = arith.constant 0 : index
    %c20_126 = arith.constant 20 : index
    %412 = vector.load %arg5[%c0_125, %c20_126] : memref<4x36xf32, #tpu.memory_space<vmem>>, vector<4x1xf32>
    %413 = vector.extract_strided_slice %275 {offsets = [0, 0], sizes = [1, 256], strides = [1, 1]} : vector<4x256xf32> to vector<1x256xf32>
    %414 = vector.broadcast %412 : vector<4x1xf32> to vector<4x256xf32>
    %415 = vector.broadcast %413 : vector<1x256xf32> to vector<4x256xf32>
    %416 = arith.mulf %414, %415 : vector<4x256xf32>
    %417 = arith.addf %411, %416 : vector<4x256xf32>
    %c0_127 = arith.constant 0 : index
    %c21_128 = arith.constant 21 : index
    %418 = vector.load %arg5[%c0_127, %c21_128] : memref<4x36xf32, #tpu.memory_space<vmem>>, vector<4x1xf32>
    %419 = vector.extract_strided_slice %275 {offsets = [1, 0], sizes = [1, 256], strides = [1, 1]} : vector<4x256xf32> to vector<1x256xf32>
    %420 = vector.broadcast %418 : vector<4x1xf32> to vector<4x256xf32>
    %421 = vector.broadcast %419 : vector<1x256xf32> to vector<4x256xf32>
    %422 = arith.mulf %420, %421 : vector<4x256xf32>
    %423 = arith.addf %417, %422 : vector<4x256xf32>
    %c0_129 = arith.constant 0 : index
    %c22_130 = arith.constant 22 : index
    %424 = vector.load %arg5[%c0_129, %c22_130] : memref<4x36xf32, #tpu.memory_space<vmem>>, vector<4x1xf32>
    %425 = vector.extract_strided_slice %275 {offsets = [2, 0], sizes = [1, 256], strides = [1, 1]} : vector<4x256xf32> to vector<1x256xf32>
    %426 = vector.broadcast %424 : vector<4x1xf32> to vector<4x256xf32>
    %427 = vector.broadcast %425 : vector<1x256xf32> to vector<4x256xf32>
    %428 = arith.mulf %426, %427 : vector<4x256xf32>
    %429 = arith.addf %423, %428 : vector<4x256xf32>
    %c0_131 = arith.constant 0 : index
    %c23_132 = arith.constant 23 : index
    %430 = vector.load %arg5[%c0_131, %c23_132] : memref<4x36xf32, #tpu.memory_space<vmem>>, vector<4x1xf32>
    %431 = vector.extract_strided_slice %275 {offsets = [3, 0], sizes = [1, 256], strides = [1, 1]} : vector<4x256xf32> to vector<1x256xf32>
    %432 = vector.broadcast %430 : vector<4x1xf32> to vector<4x256xf32>
    %433 = vector.broadcast %431 : vector<1x256xf32> to vector<4x256xf32>
    %434 = arith.mulf %432, %433 : vector<4x256xf32>
    %435 = arith.addf %429, %434 : vector<4x256xf32>
    %c0_133 = arith.constant 0 : index
    %c24_134 = arith.constant 24 : index
    %436 = vector.load %arg5[%c0_133, %c24_134] : memref<4x36xf32, #tpu.memory_space<vmem>>, vector<4x1xf32>
    %437 = vector.extract_strided_slice %279 {offsets = [0, 0], sizes = [1, 256], strides = [1, 1]} : vector<4x256xf32> to vector<1x256xf32>
    %438 = vector.broadcast %436 : vector<4x1xf32> to vector<4x256xf32>
    %439 = vector.broadcast %437 : vector<1x256xf32> to vector<4x256xf32>
    %440 = arith.mulf %438, %439 : vector<4x256xf32>
    %441 = arith.addf %435, %440 : vector<4x256xf32>
    %c0_135 = arith.constant 0 : index
    %c25_136 = arith.constant 25 : index
    %442 = vector.load %arg5[%c0_135, %c25_136] : memref<4x36xf32, #tpu.memory_space<vmem>>, vector<4x1xf32>
    %443 = vector.extract_strided_slice %279 {offsets = [1, 0], sizes = [1, 256], strides = [1, 1]} : vector<4x256xf32> to vector<1x256xf32>
    %444 = vector.broadcast %442 : vector<4x1xf32> to vector<4x256xf32>
    %445 = vector.broadcast %443 : vector<1x256xf32> to vector<4x256xf32>
    %446 = arith.mulf %444, %445 : vector<4x256xf32>
    %447 = arith.addf %441, %446 : vector<4x256xf32>
    %c0_137 = arith.constant 0 : index
    %c26_138 = arith.constant 26 : index
    %448 = vector.load %arg5[%c0_137, %c26_138] : memref<4x36xf32, #tpu.memory_space<vmem>>, vector<4x1xf32>
    %449 = vector.extract_strided_slice %279 {offsets = [2, 0], sizes = [1, 256], strides = [1, 1]} : vector<4x256xf32> to vector<1x256xf32>
    %450 = vector.broadcast %448 : vector<4x1xf32> to vector<4x256xf32>
    %451 = vector.broadcast %449 : vector<1x256xf32> to vector<4x256xf32>
    %452 = arith.mulf %450, %451 : vector<4x256xf32>
    %453 = arith.addf %447, %452 : vector<4x256xf32>
    %c0_139 = arith.constant 0 : index
    %c27_140 = arith.constant 27 : index
    %454 = vector.load %arg5[%c0_139, %c27_140] : memref<4x36xf32, #tpu.memory_space<vmem>>, vector<4x1xf32>
    %455 = vector.extract_strided_slice %279 {offsets = [3, 0], sizes = [1, 256], strides = [1, 1]} : vector<4x256xf32> to vector<1x256xf32>
    %456 = vector.broadcast %454 : vector<4x1xf32> to vector<4x256xf32>
    %457 = vector.broadcast %455 : vector<1x256xf32> to vector<4x256xf32>
    %458 = arith.mulf %456, %457 : vector<4x256xf32>
    %459 = arith.addf %453, %458 : vector<4x256xf32>
    %c0_141 = arith.constant 0 : index
    %c28_142 = arith.constant 28 : index
    %460 = vector.load %arg5[%c0_141, %c28_142] : memref<4x36xf32, #tpu.memory_space<vmem>>, vector<4x1xf32>
    %461 = vector.extract_strided_slice %283 {offsets = [0, 0], sizes = [1, 256], strides = [1, 1]} : vector<4x256xf32> to vector<1x256xf32>
    %462 = vector.broadcast %460 : vector<4x1xf32> to vector<4x256xf32>
    %463 = vector.broadcast %461 : vector<1x256xf32> to vector<4x256xf32>
    %464 = arith.mulf %462, %463 : vector<4x256xf32>
    %465 = arith.addf %459, %464 : vector<4x256xf32>
    %c0_143 = arith.constant 0 : index
    %c29_144 = arith.constant 29 : index
    %466 = vector.load %arg5[%c0_143, %c29_144] : memref<4x36xf32, #tpu.memory_space<vmem>>, vector<4x1xf32>
    %467 = vector.extract_strided_slice %283 {offsets = [1, 0], sizes = [1, 256], strides = [1, 1]} : vector<4x256xf32> to vector<1x256xf32>
    %468 = vector.broadcast %466 : vector<4x1xf32> to vector<4x256xf32>
    %469 = vector.broadcast %467 : vector<1x256xf32> to vector<4x256xf32>
    %470 = arith.mulf %468, %469 : vector<4x256xf32>
    %471 = arith.addf %465, %470 : vector<4x256xf32>
    %c0_145 = arith.constant 0 : index
    %c30_146 = arith.constant 30 : index
    %472 = vector.load %arg5[%c0_145, %c30_146] : memref<4x36xf32, #tpu.memory_space<vmem>>, vector<4x1xf32>
    %473 = vector.extract_strided_slice %283 {offsets = [2, 0], sizes = [1, 256], strides = [1, 1]} : vector<4x256xf32> to vector<1x256xf32>
    %474 = vector.broadcast %472 : vector<4x1xf32> to vector<4x256xf32>
    %475 = vector.broadcast %473 : vector<1x256xf32> to vector<4x256xf32>
    %476 = arith.mulf %474, %475 : vector<4x256xf32>
    %477 = arith.addf %471, %476 : vector<4x256xf32>
    %c0_147 = arith.constant 0 : index
    %c31_148 = arith.constant 31 : index
    %478 = vector.load %arg5[%c0_147, %c31_148] : memref<4x36xf32, #tpu.memory_space<vmem>>, vector<4x1xf32>
    %479 = vector.extract_strided_slice %283 {offsets = [3, 0], sizes = [1, 256], strides = [1, 1]} : vector<4x256xf32> to vector<1x256xf32>
    %480 = vector.broadcast %478 : vector<4x1xf32> to vector<4x256xf32>
    %481 = vector.broadcast %479 : vector<1x256xf32> to vector<4x256xf32>
    %482 = arith.mulf %480, %481 : vector<4x256xf32>
    %483 = arith.addf %477, %482 : vector<4x256xf32>
    %c0_149 = arith.constant 0 : index
    %c32_150 = arith.constant 32 : index
    %484 = vector.load %arg5[%c0_149, %c32_150] : memref<4x36xf32, #tpu.memory_space<vmem>>, vector<4x1xf32>
    %485 = vector.extract_strided_slice %287 {offsets = [0, 0], sizes = [1, 256], strides = [1, 1]} : vector<4x256xf32> to vector<1x256xf32>
    %486 = vector.broadcast %484 : vector<4x1xf32> to vector<4x256xf32>
    %487 = vector.broadcast %485 : vector<1x256xf32> to vector<4x256xf32>
    %488 = arith.mulf %486, %487 : vector<4x256xf32>
    %489 = arith.addf %483, %488 : vector<4x256xf32>
    %c0_151 = arith.constant 0 : index
    %c33_152 = arith.constant 33 : index
    %490 = vector.load %arg5[%c0_151, %c33_152] : memref<4x36xf32, #tpu.memory_space<vmem>>, vector<4x1xf32>
    %491 = vector.extract_strided_slice %287 {offsets = [1, 0], sizes = [1, 256], strides = [1, 1]} : vector<4x256xf32> to vector<1x256xf32>
    %492 = vector.broadcast %490 : vector<4x1xf32> to vector<4x256xf32>
    %493 = vector.broadcast %491 : vector<1x256xf32> to vector<4x256xf32>
    %494 = arith.mulf %492, %493 : vector<4x256xf32>
    %495 = arith.addf %489, %494 : vector<4x256xf32>
    %c0_153 = arith.constant 0 : index
    %c34_154 = arith.constant 34 : index
    %496 = vector.load %arg5[%c0_153, %c34_154] : memref<4x36xf32, #tpu.memory_space<vmem>>, vector<4x1xf32>
    %497 = vector.extract_strided_slice %287 {offsets = [2, 0], sizes = [1, 256], strides = [1, 1]} : vector<4x256xf32> to vector<1x256xf32>
    %498 = vector.broadcast %496 : vector<4x1xf32> to vector<4x256xf32>
    %499 = vector.broadcast %497 : vector<1x256xf32> to vector<4x256xf32>
    %500 = arith.mulf %498, %499 : vector<4x256xf32>
    %501 = arith.addf %495, %500 : vector<4x256xf32>
    %c0_155 = arith.constant 0 : index
    %c35_156 = arith.constant 35 : index
    %502 = vector.load %arg5[%c0_155, %c35_156] : memref<4x36xf32, #tpu.memory_space<vmem>>, vector<4x1xf32>
    %503 = vector.extract_strided_slice %287 {offsets = [3, 0], sizes = [1, 256], strides = [1, 1]} : vector<4x256xf32> to vector<1x256xf32>
    %504 = vector.broadcast %502 : vector<4x1xf32> to vector<4x256xf32>
    %505 = vector.broadcast %503 : vector<1x256xf32> to vector<4x256xf32>
    %506 = arith.mulf %504, %505 : vector<4x256xf32>
    %507 = arith.addf %501, %506 : vector<4x256xf32>
    %508 = arith.addf %507, %1 : vector<4x256xf32>
    %c0_157 = arith.constant 0 : index
    %c0_158 = arith.constant 0 : index
    %c0_159 = arith.constant 0 : index
    %509 = vector.load %arg7[%c0_157, %c0_158, %c0_159] : memref<1x4x256xf32, #tpu.memory_space<vmem>>, vector<1x4x256xf32>
    %510 = vector.shape_cast %509 : vector<1x4x256xf32> to vector<4x256xf32>
    %511 = vector.shape_cast %508 : vector<4x256xf32> to vector<1x4x256xf32>
    tpu.vector_store %arg7[%c0_157, %c0_158, %c0_159], %511 {strides = array<i32>} : memref<1x4x256xf32, #tpu.memory_space<vmem>>, vector<1x4x256xf32>,
    return
  }
  func.func @transform_0(%arg0: i32) -> (i32, i32, i32) {
    %c0_i32 = arith.constant 0 : i32
    %c0_i32_0 = arith.constant 0 : i32
    %c0_i32_1 = arith.constant 0 : i32
    return %arg0, %c0_i32, %c0_i32_0 : i32, i32, i32
  }
  func.func @transform_1(%arg0: i32) -> (i32, i32) {
    %c0_i32 = arith.constant 0 : i32
    %c0_i32_0 = arith.constant 0 : i32
    %c0_i32_1 = arith.constant 0 : i32
    return %c0_i32, %c0_i32_0 : i32, i32
  }
  func.func @transform_2(%arg0: i32) -> (i32, i32) {
    %c0_i32 = arith.constant 0 : i32
    %c0_i32_0 = arith.constant 0 : i32
    %c0_i32_1 = arith.constant 0 : i32
    return %c0_i32, %c0_i32_0 : i32, i32
  }
  func.func @transform_3(%arg0: i32) -> (i32, i32) {
    %c0_i32 = arith.constant 0 : i32
    %c0_i32_0 = arith.constant 0 : i32
    %c0_i32_1 = arith.constant 0 : i32
    return %c0_i32, %c0_i32_0 : i32, i32
  }
  func.func @transform_4(%arg0: i32) -> (i32, i32) {
    %c0_i32 = arith.constant 0 : i32
    %c0_i32_0 = arith.constant 0 : i32
    %c0_i32_1 = arith.constant 0 : i32
    return %c0_i32, %c0_i32_0 : i32, i32
  }
  func.func @transform_5(%arg0: i32) -> (i32, i32) {
    %c0_i32 = arith.constant 0 : i32
    %c0_i32_0 = arith.constant 0 : i32
    %c0_i32_1 = arith.constant 0 : i32
    return %c0_i32, %c0_i32_0 : i32, i32
  }
  func.func @transform_6(%arg0: i32) -> (i32, i32, i32) {
    %c0_i32 = arith.constant 0 : i32
    %c0_i32_0 = arith.constant 0 : i32
    %c0_i32_1 = arith.constant 0 : i32
    return %arg0, %c0_i32, %c0_i32_0 : i32, i32, i32
  }
}

</mosaic_0001>

<bundles_post_ra>
// kernel: residual_block.1
= control target key start
LH: loop header
LB: loop body
LE: loop exit
PB: predicated region body
PF: predicated region fallthrough
CT: control target
= control target key end

     0   :  { %s2006_s21 = smov 0   ;;  %s2755_s0 = inlined_call_operand.vmem [shape: f32[2,4,256], index: 0, kind: input, shape index: {}]   ;;  %s2756_s1 = inlined_call_operand.vmem [shape: f32[9,256], index: 1, kind: input, shape index: {}]   ;;  %s2757_s2 = inlined_call_operand.vmem [shape: f32[4,36], index: 2, kind: input, shape index: {}]   ;;  %s2758_s3 = inlined_call_operand.vmem [shape: f32[4,1], index: 3, kind: input, shape index: {}]   ;;  %s2759_s4 = inlined_call_operand.vmem [shape: f32[4,36], index: 4, kind: input, shape index: {}]   ;;  %s2760_s5 = inlined_call_operand.vmem [shape: f32[4,1], index: 5, kind: input, shape index: {}]   ;;  %s2761_s6 = inlined_call_operand.vmem [shape: f32[2,4,256], index: 6, kind: output, shape index: {}]  }
   0x1 LB: > { %s1771_s22 = sadd.s32 4294967295, %s1925_s21   ;;  %p1775_p0 = scmp.ge.s32.totalorder %s1925_s21, 1  ;;  %s1925_s21 = sphi %s2006_s21, %s16_s21  }
   0x2   : > { %p212_p1 = scmp.lt.s32.totalorder %s1925_s21, 3 }
   0x4   : > { %p213_p2 = pnand %p1775_p0, %p212_p1 }
   0x5   : > { %p242_p3 = scmp.lt.s32.totalorder (!%p213_p2), %s1771_s22, 1  ;;  %v1927_v0 = vmov (!%p213_p2), 0   ;;  %s1928_s27 = smov (!%p213_p2), 16   ;;  %v2068_v3 = vld [vmem:[%s2757_s2] sm:$0xf] (!%p213_p2)  ;;  %v1936_v5 = vmov (!%p213_p2), 1   ;;  %v260_v50 = vlaneseq (!%p213_p2) }
   0x6   : > { %216 = sbr.rel (%p213_p2) target bundleno = 539 (0x21b), region = 44  ;;  %1844 = vset.pattern.permute.xlu1 (!%p213_p2), %v1927_v0  ;;  %1843 = vset.pattern.permute.xlu0 (!%p213_p2), %v1927_v0  ;;  %s1929_s28 = smov (!%p213_p2), 17   ;;  %v433_v4 = vld [vmem:[%s2758_s3] sm:$0xf] (!%p213_p2)  ;;  %v1937_v6 = vmov (!%p213_p2), 2   ;;  %v1938_v7 = vmov (!%p213_p2), 3  }
   0x7   : > { %s1930_s29 = smov (!%p213_p2), 15   ;;  %s1931_s30 = smov (!%p213_p2), 1   ;;  %v1939_v8 = vmov (!%p213_p2), 5   ;;  %v1940_v9 = vmov (!%p213_p2), 4   ;;  %v1941_v10 = vmov (!%p213_p2), 8   ;;  %v1942_v11 = vmov (!%p213_p2), 6  }
   0x8   : > { %s1932_s7 = smov (!%p213_p2), 127   ;;  %s1933_s8 = smov (!%p213_p2), 113   ;;  %v1943_v12 = vmov (!%p213_p2), 11   ;;  %v1944_v13 = vmov (!%p213_p2), 7   ;;  %v1945_v14 = vmov (!%p213_p2), 14   ;;  %v1946_v15 = vmov (!%p213_p2), 9  }
   0x9   : > { %s1934_s9 = smov (!%p213_p2), 112   ;;  %s1935_s10 = smov (!%p213_p2), 111   ;;  %v1947_v16 = vmov (!%p213_p2), 17   ;;  %v1948_v17 = vmov (!%p213_p2), 10   ;;  %v1949_v18 = vmov (!%p213_p2), 20   ;;  %v1950_v19 = vmov (!%p213_p2), 12  }
   0xa   : > { %v1951_v20 = vmov (!%p213_p2), 23   ;;  %v1952_v21 = vmov (!%p213_p2), 13   ;;  %v1953_v22 = vmov (!%p213_p2), 26   ;;  %v1954_v23 = vmov (!%p213_p2), 15   ;;  %v1124_v38 = vld [vmem:[%s2760_s5] sm:$0xf] (!%p213_p2) }
   0xb   : > { %v2774_v24 = vmov (!%p213_p2), 29   ;;  %v1956_v25 = vmov (!%p213_p2), 16   ;;  %v2772_v26 = vmov (!%p213_p2), 32   ;;  %v1958_v27 = vmov (!%p213_p2), 18   ;;  %v2147_v40 = vld [vmem:[%s2759_s4] sm:$0xf] (!%p213_p2) }
   0xc   : > { %v2770_v28 = vmov (!%p213_p2), 35   ;;  %v1960_v29 = vmov (!%p213_p2), 19   ;;  %v2773_v30 = vmov (!%p213_p2), 21   ;;  %v2771_v31 = vmov (!%p213_p2), 22  }
   0xd   : > { %s2789_s22 = smov (!%p242_p3, %s1771_s22), 1  ;;  %v2769_v32 = vmov 24   ;;  %v2768_v35 = vmov 25   ;;  %v2767_v39 = vmov 27   ;;  %v2766_v43 = vmov 28  }
   0xe   : > { %s1789_s23 = sshll.u32 %s2789_s22, 3  ;;  %v2765_v46 = vmov 30   ;;  %v2764_v47 = vmov 31   ;;  %v2763_v51 = vmov 33   ;;  %v2175_v52 = vshrl.u32 %v260_v50, 7 }
   0xf   : > { %s2024_s26 = scalar_lea.vmem %s2755_s0, %s1789_s23  ;;  %v2182_v55 = vand.u32 127, %v260_v50  ;;  %v265_v56 = vld [vmem:[%s2756_s1] ss:$8 sm:$0x3]  ;;  %v2762_v57 = vmov 34  }
  0x10   : > { %v2027_v1 = vld [vmem:[%s2024_s26] sm:$0xff]  ;;  %v2189_v58 = vsub.s32 0, %v2175_v52  ;;  %v2192_v59 = vsub.s32 1, %v2175_v52 }
  0x11   : > { %279 = vrot.lane.b32.xlu1 %v2027_v1, %s1928_s27  ;;  %256 = vrot.lane.b32.xlu0 %v2027_v1, %s1929_s28  ;;  %v2035_v2 = vcombine.high %v2027_v1, %v2027_v1  ;;  %vm262_vm0 = vcmp.lt.s32.totalorder %v2182_v55, 17  ;;  %v1780_v50 = vld [vmem:[%s2756_s1 + $0x1] ss:$8 sm:$0x3]  ;;  %vm283_vm1 = vcmp.lt.s32.totalorder %v2182_v55, 16  ;;  %vm305_vm2 = vcmp.lt.s32.totalorder %v2182_v55, 15 }
  0x12   : > { %v2197_v60 = vrot.slane %v265_v56, %v2189_v58  ;;  %v2200_v61 = vrot.slane %v265_v56, %v2192_v59  ;;  %vm327_vm3 = vcmp.lt.s32.totalorder %v2182_v55, 1  ;;  %vm349_vm4 = vcmp.lt.s32.totalorder %v2182_v55, 127 }
  0x13   : > { %vm371_vm5 = vcmp.lt.s32.totalorder %v2182_v55, 113  ;;  %vm393_vm6 = vcmp.lt.s32.totalorder %v2182_v55, 112  ;;  %vm415_vm7 = vcmp.lt.s32.totalorder %v2182_v55, 111 }
  0x15   : > { %301 = vrot.lane.b32.xlu0 %v2027_v1, %s1930_s29  ;;  %281 = vrot.lane.b32.xlu1 %v2035_v2, %s1928_s27 }
  0x19   : > { %303 = vrot.lane.b32.xlu1 %v2035_v2, %s1930_s29  ;;  %258 = vrot.lane.b32.xlu0 %v2035_v2, %s1929_s28 }
  0x1d   : > { %325 = vrot.lane.b32.xlu1 %v2035_v2, %s1931_s30  ;;  %323 = vrot.lane.b32.xlu0 %v2027_v1, %s1931_s30 }
  0x21   : > { %347 = vrot.lane.b32.xlu1 %v2035_v2, %s1932_s7  ;;  %345 = vrot.lane.b32.xlu0 %v2027_v1, %s1932_s7 }
  0x25   : > { %369 = vrot.lane.b32.xlu1 %v2035_v2, %s1933_s8  ;;  %367 = vrot.lane.b32.xlu0 %v2027_v1, %s1933_s8 }
  0x29   : > { %391 = vrot.lane.b32.xlu1 %v2035_v2, %s1934_s9  ;;  %389 = vrot.lane.b32.xlu0 %v2027_v1, %s1934_s9 }
  0x2d   : > { %413 = vrot.lane.b32.xlu1 %v2035_v2, %s1935_s10  ;;  %411 = vrot.lane.b32.xlu0 %v2027_v1, %s1935_s10 }
  0x31   : > { %443 = vperm.xlu1 %1844, %v2068_v3   ;;  %436 = vperm.xlu0 %1843, %v433_v4  }
  0x35   : > { %1845 = vset.pattern.permute.xlu1 %v1936_v5  ;;  %1846 = vset.pattern.permute.xlu0 %v1937_v6 }
  0x36   : > { %459 = vperm.xlu1 %1845, %v2068_v3   ;;  %475 = vperm.xlu0 %1846, %v2068_v3  }
  0x3a   : > { %1847 = vset.pattern.permute.xlu1 %v1938_v7  ;;  %1849 = vset.pattern.permute.xlu0 %v1939_v8 }
  0x3b   : > { %491 = vperm.xlu1 %1847, %v2068_v3   ;;  %523 = vperm.xlu0 %1849, %v2068_v3  }
  0x3f   : > { %1848 = vset.pattern.permute.xlu1 %v1940_v9  ;;  %1852 = vset.pattern.permute.xlu0 %v1941_v10 }
  0x40   : > { %507 = vperm.xlu1 %1848, %v2068_v3   ;;  %571 = vperm.xlu0 %1852, %v2068_v3  }
  0x44   : > { %1850 = vset.pattern.permute.xlu1 %v1942_v11  ;;  %1855 = vset.pattern.permute.xlu0 %v1943_v12 }
  0x45   : > { %539 = vperm.xlu1 %1850, %v2068_v3   ;;  %619 = vperm.xlu0 %1855, %v2068_v3  }
  0x49   : > { %1851 = vset.pattern.permute.xlu1 %v1944_v13  ;;  %1858 = vset.pattern.permute.xlu0 %v1945_v14 }
  0x4a   : > { %555 = vperm.xlu1 %1851, %v2068_v3   ;;  %667 = vperm.xlu0 %1858, %v2068_v3  }
  0x4e   : > { %1853 = vset.pattern.permute.xlu1 %v1946_v15  ;;  %1861 = vset.pattern.permute.xlu0 %v1947_v16 }
  0x4f   : > { %587 = vperm.xlu1 %1853, %v2068_v3   ;;  %725 = vperm.xlu0 %1861, %v2068_v3  }
  0x53   : > { %1854 = vset.pattern.permute.xlu1 %v1948_v17  ;;  %1864 = vset.pattern.permute.xlu0 %v1949_v18 }
  0x54   : > { %603 = vperm.xlu1 %1854, %v2068_v3   ;;  %803 = vperm.xlu0 %1864, %v2068_v3  }
  0x58   : > { %1856 = vset.pattern.permute.xlu1 %v1950_v19  ;;  %1867 = vset.pattern.permute.xlu0 %v1951_v20 }
  0x59   : > { %635 = vperm.xlu1 %1856, %v2068_v3   ;;  %851 = vperm.xlu0 %1867, %v2068_v3  }
  0x5d   : > { %1857 = vset.pattern.permute.xlu1 %v1952_v21  ;;  %1870 = vset.pattern.permute.xlu0 %v1953_v22 }
  0x5e   : > { %651 = vperm.xlu1 %1857, %v2068_v3   ;;  %899 = vperm.xlu0 %1870, %v2068_v3  }
  0x62   : > { %1859 = vset.pattern.permute.xlu1 %v1954_v23  ;;  %1873 = vset.pattern.permute.xlu0 %v2774_v24 }
  0x63   : > { %683 = vperm.xlu1 %1859, %v2068_v3   ;;  %947 = vperm.xlu0 %1873, %v2068_v3  }
  0x67   : > { %1860 = vset.pattern.permute.xlu1 %v1956_v25  ;;  %1876 = vset.pattern.permute.xlu0 %v2772_v26 }
  0x68   : > { %699 = vperm.xlu1 %1860, %v2068_v3   ;;  %995 = vperm.xlu0 %1876, %v2068_v3  }
  0x6c   : > { %1862 = vset.pattern.permute.xlu1 %v1958_v27  ;;  %1879 = vset.pattern.permute.xlu0 %v2770_v28  ;;  %v2250_v28 = vsub.s32 3, %v2175_v52 }
  0x6d   : > { %751 = vperm.xlu1 %1862, %v2068_v3   ;;  %1043 = vperm.xlu0 %1879, %v2068_v3  }
  0x71   : > { %1863 = vset.pattern.permute.xlu1 %v1960_v29  ;;  %1880 = vset.pattern.permute.xlu0 %v1927_v0 }
  0x72   : > { %777 = vperm.xlu1 %1863, %v2068_v3   ;;  %1127 = vperm.xlu0 %1880, %v1124_v38  }
  0x76   : > { %1865 = vset.pattern.permute.xlu1 %v2773_v30  ;;  %1883 = vset.pattern.permute.xlu0 %v1937_v6 }
  0x77   : > { %819 = vperm.xlu1 %1865, %v2068_v3   ;;  %1166 = vperm.xlu0 %1883, %v2147_v40  }
  0x7b   : > { %1866 = vset.pattern.permute.xlu1 %v2771_v31  ;;  %1886 = vset.pattern.permute.xlu0 %v1939_v8 }
  0x7c   : > { %835 = vperm.xlu1 %1866, %v2068_v3   ;;  %1214 = vperm.xlu0 %1886, %v2147_v40  }
  0x80   : > { %1868 = vset.pattern.permute.xlu1 %v2769_v32  ;;  %1889 = vset.pattern.permute.xlu0 %v1941_v10 }
  0x81   : > { %867 = vperm.xlu1 %1868, %v2068_v3   ;;  %1262 = vperm.xlu0 %1889, %v2147_v40  }
  0x83   : > { %v2131_v33 = vpop.permute.xlu1 %279  ;;  %v257_v34 = vpop.permute.xlu0 %256 }
  0x85   : > { %1869 = vset.pattern.permute.xlu1 %v2768_v35  ;;  %1892 = vset.pattern.permute.xlu0 %v1943_v12 }
  0x86   : > { %883 = vperm.xlu1 %1869, %v2068_v3   ;;  %1310 = vperm.xlu0 %1892, %v2147_v40  }
  0x87   : > { %v2135_v36 = vpop.permute.xlu0 %301  ;;  %v2137_v37 = vpop.permute.xlu1 %281 }
  0x88   : > { %v284_v35 = vsel %vm283_vm1, %v2131_v33, %v2137_v37  ;;  %v285_v32 = vsel %vm283_vm1, %v2137_v37, %v2131_v33 }
  0x8a   : > { %1871 = vset.pattern.permute.xlu1 %v2767_v39  ;;  %1895 = vset.pattern.permute.xlu0 %v1945_v14 }
  0x8b   : > { %915 = vperm.xlu1 %1871, %v2068_v3   ;;  %v2150_v41 = vpop.permute.xlu1 %303  ;;  %v259_v42 = vpop.permute.xlu0 %258 }
  0x8c   : > { %v263_v4 = vsel %vm262_vm0, %v257_v34, %v259_v42  ;;  %v264_v6 = vsel %vm262_vm0, %v259_v42, %v257_v34  ;;  %v2223_v42 = vsub.s32 2, %v2175_v52 }
  0x8d   : > { %v278_v8 = vmul.f32 %v2200_v61, %v263_v4 }
  0x8f   : > { %1872 = vset.pattern.permute.xlu1 %v2766_v43  ;;  %v2157_v44 = vpop.permute.xlu1 %325  ;;  %v2159_v45 = vpop.permute.xlu0 %323  ;;  %v453_v38 = vrot.slane %v278_v8, %v2189_v58  ;;  %v501_v33 = vrot.slane %v278_v8, %v2250_v28 }
  0x90   : > { %931 = vperm.xlu1 %1872, %v2068_v3  }
  0x93   : > { %v2166_v48 = vpop.permute.xlu1 %347  ;;  %v2168_v49 = vpop.permute.xlu0 %345 }
  0x94   : > { %1874 = vset.pattern.permute.xlu1 %v2765_v46 }
  0x95   : > { %963 = vperm.xlu1 %1874, %v2068_v3  }
  0x97   : > { %v2177_v53 = vpop.permute.xlu1 %369  ;;  %v2179_v54 = vpop.permute.xlu0 %367 }
  0x99   : > { %1875 = vset.pattern.permute.xlu1 %v2764_v47  ;;  %v2236_v47 = vrot.slane %v1780_v50, %v2189_v58 }
  0x9a   : > { %979 = vperm.xlu1 %1875, %v2068_v3  }
  0x9b   : > { %v2202_v62 = vpop.permute.xlu1 %391  ;;  %v2204_v63 = vpop.permute.xlu0 %389 }
  0x9e   : > { %1877 = vset.pattern.permute.xlu1 %v2763_v51  ;;  %v485_v51 = vrot.slane %v278_v8, %v2223_v42 }
  0x9f   : > { %1011 = vperm.xlu1 %1877, %v2068_v3   ;;  %v2214_v10 = vpop.permute.xlu1 %413  ;;  %v2216_v12 = vpop.permute.xlu0 %411 }
  0xa3   : > { %1878 = vset.pattern.permute.xlu1 %v2762_v57 }
  0xa4   : > { %1027 = vperm.xlu1 %1878, %v2068_v3   ;;  %v277_v3 = vmul.f32 %v2197_v60, %v264_v6 }
  0xa6   : > { %v449_v14 = vrot.slane %v277_v3, %v2189_v58  ;;  %v465_v6 = vrot.slane %v277_v3, %v2192_v59  ;;  %v481_v57 = vrot.slane %v277_v3, %v2223_v42  ;;  %v497_v31 = vrot.slane %v277_v3, %v2250_v28 }
  0xa8   : > { %1881 = vset.pattern.permute.xlu1 %v1927_v0 }
  0xa9   : > { %1134 = vperm.xlu1 %1881, %v2147_v40  }
  0xad   : > { %1882 = vset.pattern.permute.xlu1 %v1936_v5  ;;  %v469_v5 = vrot.slane %v278_v8, %v2192_v59 }
  0xae   : > { %1150 = vperm.xlu1 %1882, %v2147_v40  }
  0xb0   : > { %v444_v34 = vpop.permute.xlu1 %443  ;;  %v437_v0 = vpop.permute.xlu0 %436 }
  0xb1   : > { %v454_v56 = vmul.f32 %v449_v14, %v444_v34  ;;  %v455_v4 = vmul.f32 %v453_v38, %v444_v34  ;;  %v2239_v14 = vrot.slane %v1780_v50, %v2192_v59 }
  0xb2   : > { %1884 = vset.pattern.permute.xlu1 %v1938_v7 }
  0xb3   : > { %1182 = vperm.xlu1 %1884, %v2147_v40   ;;  %v456_v46 = vadd.f32 %v454_v56, %v437_v0  ;;  %v457_v43 = vadd.f32 %v455_v4, %v437_v0 }
  0xb5   : > { %v460_v38 = vpop.permute.xlu1 %459  ;;  %v476_v34 = vpop.permute.xlu0 %475 }
  0xb6   : > { %v470_v39 = vmul.f32 %v465_v6, %v460_v38  ;;  %v471_v7 = vmul.f32 %v469_v5, %v460_v38  ;;  %v486_v0 = vmul.f32 %v481_v57, %v476_v34  ;;  %v487_v4 = vmul.f32 %v485_v51, %v476_v34 }
  0xb7   : > { %1885 = vset.pattern.permute.xlu1 %v1940_v9  ;;  %v299_v6 = vmul.f32 %v2236_v47, %v285_v32  ;;  %v300_v5 = vmul.f32 %v2239_v14, %v284_v35  ;;  %v1781_v35 = vld [vmem:[%s2756_s1 + $0x2] ss:$8 sm:$0x3] }
  0xb8   : > { %v472_v50 = vadd.f32 %v470_v39, %v456_v46  ;;  %v473_v56 = vadd.f32 %v471_v7, %v457_v43  ;;  %1198 = vperm.xlu1 %1885, %v2147_v40   ;;  %v2271_v7 = vrot.slane %v1781_v35, %v2189_v58 }
  0xb9   : > { %v513_v9 = vrot.slane %v299_v6, %v2189_v58  ;;  %v517_v39 = vrot.slane %v300_v5, %v2189_v58  ;;  %v533_v3 = vrot.slane %v300_v5, %v2192_v59 }
  0xba   : > { %v492_v38 = vpop.permute.xlu1 %491  ;;  %v488_v37 = vadd.f32 %v486_v0, %v472_v50  ;;  %v489_v26 = vadd.f32 %v487_v4, %v473_v56  ;;  %v545_v50 = vrot.slane %v299_v6, %v2223_v42  ;;  %v306_v0 = vsel %vm305_vm2, %v2135_v36, %v2150_v41 }
  0xbb   : > { %v502_v30 = vmul.f32 %v497_v31, %v492_v38  ;;  %v503_v24 = vmul.f32 %v501_v33, %v492_v38  ;;  %v524_v31 = vpop.permute.xlu0 %523  ;;  %v307_v4 = vsel %vm305_vm2, %v2150_v41, %v2135_v36 }
  0xbc   : > { %1887 = vset.pattern.permute.xlu1 %v1942_v11  ;;  %v529_v11 = vrot.slane %v299_v6, %v2192_v59 }
  0xbd   : > { %1230 = vperm.xlu1 %1887, %v2147_v40   ;;  %v504_v43 = vadd.f32 %v502_v30, %v488_v37  ;;  %v505_v46 = vadd.f32 %v503_v24, %v489_v26  ;;  %v2274_v24 = vrot.slane %v1781_v35, %v2192_v59  ;;  %v535_v30 = vmul.f32 %v533_v3, %v524_v31 }
  0xbe   : > { %v534_v26 = vmul.f32 %v529_v11, %v524_v31  ;;  %v561_v35 = vrot.slane %v299_v6, %v2250_v28 }
  0xbf   : > { %v508_v32 = vpop.permute.xlu1 %507  ;;  %v572_v31 = vpop.permute.xlu0 %571 }
  0xc0   : > { %v518_v51 = vmul.f32 %v513_v9, %v508_v32  ;;  %v519_v57 = vmul.f32 %v517_v39, %v508_v32  ;;  %v321_v39 = vmul.f32 %v2271_v7, %v307_v4  ;;  %v322_v32 = vmul.f32 %v2274_v24, %v306_v0 }
  0xc1   : > { %1888 = vset.pattern.permute.xlu1 %v1944_v13  ;;  %v549_v13 = vrot.slane %v300_v5, %v2223_v42  ;;  %v329_v0 = vsel %vm327_vm3, %v2157_v44, %v2159_v45 }
  0xc2   : > { %v520_v8 = vadd.f32 %v518_v51, %v504_v43  ;;  %v521_v34 = vadd.f32 %v519_v57, %v505_v46  ;;  %1246 = vperm.xlu1 %1888, %v2147_v40   ;;  %v565_v43 = vrot.slane %v300_v5, %v2250_v28  ;;  %v577_v11 = vrot.slane %v321_v39, %v2189_v58 }
  0xc3   : > { %v581_v6 = vrot.slane %v322_v32, %v2189_v58 }
  0xc4   : > { %v540_v56 = vpop.permute.xlu1 %539  ;;  %v536_v38 = vadd.f32 %v534_v26, %v520_v8  ;;  %v537_v33 = vadd.f32 %v535_v30, %v521_v34  ;;  %v582_v8 = vmul.f32 %v577_v11, %v572_v31  ;;  %v593_v26 = vrot.slane %v321_v39, %v2192_v59 }
  0xc5   : > { %v550_v37 = vmul.f32 %v545_v50, %v540_v56  ;;  %v551_v9 = vmul.f32 %v549_v13, %v540_v56  ;;  %v583_v34 = vmul.f32 %v581_v6, %v572_v31  ;;  %v597_v30 = vrot.slane %v322_v32, %v2192_v59 }
  0xc6   : > { %1890 = vset.pattern.permute.xlu1 %v1946_v15  ;;  %v1782_v15 = vld [vmem:[%s2756_s1 + $0x3] ss:$8 sm:$0x3]  ;;  %v328_v56 = vsel %vm327_vm3, %v2159_v45, %v2157_v44  ;;  %v629_v31 = vrot.slane %v322_v32, %v2250_v28 }
  0xc7   : > { %1278 = vperm.xlu1 %1890, %v2147_v40   ;;  %v552_v51 = vadd.f32 %v550_v37, %v536_v38  ;;  %v553_v57 = vadd.f32 %v551_v9, %v537_v33  ;;  %v2306_v13 = vrot.slane %v1782_v15, %v2192_v59  ;;  %v609_v9 = vrot.slane %v321_v39, %v2223_v42 }
  0xc9   : > { %v556_v46 = vpop.permute.xlu1 %555 }
  0xca   : > { %v566_v36 = vmul.f32 %v561_v35, %v556_v46  ;;  %v567_v41 = vmul.f32 %v565_v43, %v556_v46  ;;  %v613_v35 = vrot.slane %v322_v32, %v2223_v42  ;;  %v344_v46 = vmul.f32 %v2306_v13, %v328_v56 }
  0xcb   : > { %1891 = vset.pattern.permute.xlu1 %v1948_v17  ;;  %v2303_v17 = vrot.slane %v1782_v15, %v2189_v58 }
  0xcc   : > { %v568_v3 = vadd.f32 %v566_v36, %v552_v51  ;;  %v569_v5 = vadd.f32 %v567_v41, %v553_v57  ;;  %1294 = vperm.xlu1 %1891, %v2147_v40   ;;  %v620_v41 = vpop.permute.xlu0 %619  ;;  %v661_v32 = vrot.slane %v344_v46, %v2192_v59 }
  0xcd   : > { %v343_v43 = vmul.f32 %v2303_v17, %v329_v0  ;;  %v734_v0 = vsub.s32 5, %v2175_v52 }
  0xce   : > { %v588_v50 = vpop.permute.xlu1 %587  ;;  %v584_v4 = vadd.f32 %v582_v8, %v568_v3  ;;  %v585_v38 = vadd.f32 %v583_v34, %v569_v5  ;;  %v631_v3 = vmul.f32 %v629_v31, %v620_v41  ;;  %v645_v34 = vrot.slane %v344_v46, %v2189_v58 }
  0xcf   : > { %v598_v33 = vmul.f32 %v593_v26, %v588_v50  ;;  %v599_v37 = vmul.f32 %v597_v30, %v588_v50  ;;  %v641_v8 = vrot.slane %v343_v43, %v2189_v58  ;;  %v760_v31 = vsub.s32 6, %v2175_v52 }
  0xd0   : > { %1893 = vset.pattern.permute.xlu1 %v1950_v19  ;;  %v625_v19 = vrot.slane %v321_v39, %v2250_v28  ;;  %v657_v39 = vrot.slane %v343_v43, %v2192_v59 }
  0xd1   : > { %1326 = vperm.xlu1 %1893, %v2147_v40   ;;  %v600_v57 = vadd.f32 %v598_v33, %v584_v4  ;;  %v601_v36 = vadd.f32 %v599_v37, %v585_v38 }
  0xd2   : > { %v630_v6 = vmul.f32 %v625_v19, %v620_v41  ;;  %v731_v41 = vrot.slane %v2027_v1, %v2192_v59  ;;  %v735_v19 = vrot.slane %v2027_v1, %v734_v0 }
  0xd3   : > { %v604_v51 = vpop.permute.xlu1 %603 }
  0xd4   : > { %v614_v44 = vmul.f32 %v609_v9, %v604_v51  ;;  %v615_v45 = vmul.f32 %v613_v35, %v604_v51  ;;  %v668_v35 = vpop.permute.xlu0 %667  ;;  %v705_v51 = vrot.slane %v2027_v1, %v2189_v58  ;;  %v741_v0 = vrot.slane %v731_v41, %v2192_v59 }
  0xd5   : > { %1894 = vset.pattern.permute.xlu1 %v1952_v21  ;;  %v708_v21 = vsub.s32 4, %v2175_v52 }
  0xd6   : > { %v616_v15 = vadd.f32 %v614_v44, %v600_v57  ;;  %v617_v11 = vadd.f32 %v615_v45, %v601_v36  ;;  %1342 = vperm.xlu1 %1894, %v2147_v40   ;;  %v677_v36 = vrot.slane %v344_v46, %v2223_v42 }
  0xd7   : > { %v709_v57 = vrot.slane %v2027_v1, %v708_v21  ;;  %v757_v21 = vrot.slane %v2027_v1, %v2223_v42 }
  0xd8   : > { %v636_v5 = vpop.permute.xlu1 %635  ;;  %v632_v26 = vadd.f32 %v630_v6, %v616_v15  ;;  %v633_v30 = vadd.f32 %v631_v3, %v617_v11  ;;  %v679_v11 = vmul.f32 %v677_v36, %v668_v35  ;;  %v689_v3 = vrot.slane %v343_v43, %v2250_v28 }
  0xd9   : > { %v646_v50 = vmul.f32 %v641_v8, %v636_v5  ;;  %v647_v56 = vmul.f32 %v645_v34, %v636_v5  ;;  %v693_v5 = vrot.slane %v344_v46, %v2250_v28  ;;  %v715_v8 = vrot.slane %v705_v51, %v2189_v58 }
  0xda   : > { %1896 = vset.pattern.permute.xlu1 %v1954_v23  ;;  %v673_v23 = vrot.slane %v343_v43, %v2223_v42  ;;  %v719_v34 = vrot.slane %v709_v57, %v2189_v58  ;;  %v745_v43 = vrot.slane %v735_v19, %v2192_v59  ;;  %v767_v51 = vrot.slane %v757_v21, %v2223_v42 }
  0xdb   : > { %v648_v38 = vadd.f32 %v646_v50, %v632_v26  ;;  %v649_v33 = vadd.f32 %v647_v56, %v633_v30  ;;  %v783_v57 = vrot.slane %v2027_v1, %v2250_v28 }
  0xdc   : > { %v678_v15 = vmul.f32 %v673_v23, %v668_v35  ;;  %v726_v35 = vpop.permute.xlu0 %725 }
  0xdd   : > { %v652_v4 = vpop.permute.xlu1 %651  ;;  %v746_v36 = vmul.f32 %v741_v0, %v726_v35 }
  0xde   : > { %v662_v37 = vmul.f32 %v657_v39, %v652_v4  ;;  %v663_v9 = vmul.f32 %v661_v32, %v652_v4  ;;  %v761_v39 = vrot.slane %v2027_v1, %v760_v31  ;;  %v786_v32 = vsub.s32 7, %v2175_v52 }
  0xe0   : > { %v664_v44 = vadd.f32 %v662_v37, %v648_v38  ;;  %v665_v45 = vadd.f32 %v663_v9, %v649_v33  ;;  %v1783_v9 = vld [vmem:[%s2756_s1 + $0x5] ss:$8 sm:$0x3]  ;;  %v771_v52 = vrot.slane %v761_v39, %v2223_v42  ;;  %v787_v23 = vrot.slane %v2027_v1, %v786_v32 }
  0xe1   : > { %v2362_v19 = vrot.slane %v1783_v9, %v2189_v58  ;;  %v2365_v31 = vrot.slane %v1783_v9, %v2192_v59  ;;  %v351_v1 = vsel %vm349_vm4, %v2166_v48, %v2168_v49 }
  0xe2   : > { %v684_v6 = vpop.permute.xlu1 %683  ;;  %v680_v26 = vadd.f32 %v678_v15, %v664_v44  ;;  %v681_v30 = vadd.f32 %v679_v11, %v665_v45  ;;  %v747_v44 = vmul.f32 %v745_v43, %v726_v35  ;;  %v350_v11 = vsel %vm349_vm4, %v2168_v49, %v2166_v48  ;;  %v804_v48 = vpop.permute.xlu0 %803  ;;  %v1784_v49 = vld [vmem:[%s2756_s1 + $0x6] ss:$8 sm:$0x3] }
  0xe3   : > { %v694_v50 = vmul.f32 %v689_v3, %v684_v6  ;;  %v695_v56 = vmul.f32 %v693_v5, %v684_v6  ;;  %v793_v6 = vrot.slane %v783_v57, %v2250_v28  ;;  %v797_v3 = vrot.slane %v787_v23, %v2250_v28 }
  0xe4   : > { %v2391_v57 = vrot.slane %v1784_v49, %v2192_v59  ;;  %v372_v23 = vsel %vm371_vm5, %v2179_v54, %v2177_v53 }
  0xe5   : > { %v696_v4 = vadd.f32 %v694_v50, %v680_v26  ;;  %v697_v38 = vadd.f32 %v695_v56, %v681_v30  ;;  %v365_v30 = vmul.f32 %v2362_v19, %v350_v11  ;;  %v366_v50 = vmul.f32 %v2365_v31, %v351_v1 }
  0xe7   : > { %v700_v46 = vpop.permute.xlu1 %699  ;;  %v809_v43 = vrot.slane %v365_v30, %v2189_v58  ;;  %v825_v35 = vrot.slane %v365_v30, %v2192_v59  ;;  %v841_v11 = vrot.slane %v365_v30, %v2223_v42  ;;  %v845_v1 = vrot.slane %v366_v50, %v2223_v42 }
  0xe8   : > { %v720_v33 = vmul.f32 %v715_v8, %v700_v46  ;;  %v721_v37 = vmul.f32 %v719_v34, %v700_v46  ;;  %v813_v46 = vrot.slane %v366_v50, %v2189_v58 }
  0xea   : > { %v722_v45 = vadd.f32 %v720_v33, %v696_v4  ;;  %v723_v41 = vadd.f32 %v721_v37, %v697_v38  ;;  %v814_v33 = vmul.f32 %v809_v43, %v804_v48  ;;  %v815_v37 = vmul.f32 %v813_v46, %v804_v48 }
  0xec   : > { %v752_v15 = vpop.permute.xlu1 %751  ;;  %v748_v5 = vadd.f32 %v746_v36, %v722_v45  ;;  %v749_v8 = vadd.f32 %v747_v44, %v723_v41  ;;  %v373_v36 = vsel %vm371_vm5, %v2177_v53, %v2179_v54  ;;  %v857_v53 = vrot.slane %v365_v30, %v2250_v28 }
  0xed   : > { %v772_v34 = vmul.f32 %v767_v51, %v752_v15  ;;  %v773_v26 = vmul.f32 %v771_v52, %v752_v15  ;;  %v829_v51 = vrot.slane %v366_v50, %v2192_v59  ;;  %v2388_v52 = vrot.slane %v1784_v49, %v2189_v58 }
  0xee   : > { %v861_v54 = vrot.slane %v366_v50, %v2250_v28 }
  0xef   : > { %v774_v21 = vadd.f32 %v772_v34, %v748_v5  ;;  %v775_v39 = vadd.f32 %v773_v26, %v749_v8 }
  0xf1   : > { %v778_v56 = vpop.permute.xlu1 %777 }
  0xf2   : > { %v798_v32 = vmul.f32 %v793_v6, %v778_v56  ;;  %v799_v0 = vmul.f32 %v797_v3, %v778_v56  ;;  %v387_v6 = vmul.f32 %v2388_v52, %v372_v23  ;;  %v388_v3 = vmul.f32 %v2391_v57, %v373_v36 }
  0xf3   : > { %v394_v23 = vsel %vm393_vm6, %v2204_v63, %v2202_v62  ;;  %v395_v36 = vsel %vm393_vm6, %v2202_v62, %v2204_v63 }
  0xf4   : > { %v800_v4 = vadd.f32 %v798_v32, %v774_v21  ;;  %v801_v38 = vadd.f32 %v799_v0, %v775_v39  ;;  %v852_v21 = vpop.permute.xlu0 %851  ;;  %v873_v43 = vrot.slane %v387_v6, %v2189_v58  ;;  %v877_v46 = vrot.slane %v388_v3, %v2189_v58 }
  0xf5   : > { %v862_v0 = vmul.f32 %v857_v53, %v852_v21  ;;  %v863_v48 = vmul.f32 %v861_v54, %v852_v21  ;;  %v889_v50 = vrot.slane %v387_v6, %v2192_v59  ;;  %v921_v62 = vrot.slane %v387_v6, %v2250_v28 }
  0xf6   : > { %v820_v9 = vpop.permute.xlu1 %819  ;;  %v816_v44 = vadd.f32 %v814_v33, %v800_v4  ;;  %v817_v45 = vadd.f32 %v815_v37, %v801_v38  ;;  %v1785_v4 = vld [vmem:[%s2756_s1 + $0x7] ss:$8 sm:$0x3]  ;;  %v925_v63 = vrot.slane %v388_v3, %v2250_v28 }
  0xf7   : > { %v830_v41 = vmul.f32 %v825_v35, %v820_v9  ;;  %v831_v15 = vmul.f32 %v829_v51, %v820_v9  ;;  %v893_v9 = vrot.slane %v388_v3, %v2192_v59  ;;  %v2416_v35 = vrot.slane %v1785_v4, %v2189_v58 }
  0xf8   : > { %v2419_v51 = vrot.slane %v1785_v4, %v2192_v59 }
  0xf9   : > { %v832_v8 = vadd.f32 %v830_v41, %v816_v44  ;;  %v833_v34 = vadd.f32 %v831_v15, %v817_v45 }
  0xfa   : > { %v410_v21 = vmul.f32 %v2419_v51, %v395_v36 }
  0xfb   : > { %v836_v5 = vpop.permute.xlu1 %835 }
  0xfc   : > { %v846_v26 = vmul.f32 %v841_v11, %v836_v5  ;;  %v847_v56 = vmul.f32 %v845_v1, %v836_v5  ;;  %v900_v1 = vpop.permute.xlu0 %899  ;;  %v905_v5 = vrot.slane %v387_v6, %v2223_v42 }
  0xfe   : > { %v848_v39 = vadd.f32 %v846_v26, %v832_v8  ;;  %v849_v32 = vadd.f32 %v847_v56, %v833_v34  ;;  %v909_v8 = vrot.slane %v388_v3, %v2223_v42  ;;  %v409_v56 = vmul.f32 %v2416_v35, %v394_v23 }
  0xff   : > { %v910_v53 = vmul.f32 %v905_v5, %v900_v1  ;;  %v973_v5 = vrot.slane %v410_v21, %v2223_v42 }
 0x100   : > { %v868_v49 = vpop.permute.xlu1 %867  ;;  %v864_v38 = vadd.f32 %v862_v0, %v848_v39  ;;  %v865_v33 = vadd.f32 %v863_v48, %v849_v32  ;;  %v911_v54 = vmul.f32 %v909_v8, %v900_v1  ;;  %v948_v6 = vpop.permute.xlu0 %947  ;;  %v953_v3 = vrot.slane %v409_v56, %v2192_v59 }
 0x101   : > { %v878_v30 = vmul.f32 %v873_v43, %v868_v49  ;;  %v879_v37 = vmul.f32 %v877_v46, %v868_v49  ;;  %v937_v43 = vrot.slane %v409_v56, %v2189_v58  ;;  %v941_v46 = vrot.slane %v410_v21, %v2189_v58 }
 0x102   : > { %v969_v1 = vrot.slane %v409_v56, %v2223_v42  ;;  %v416_v8 = vsel %vm415_vm7, %v2216_v12, %v2214_v10 }
 0x103   : > { %v880_v45 = vadd.f32 %v878_v30, %v864_v38  ;;  %v881_v41 = vadd.f32 %v879_v37, %v865_v33  ;;  %v1786_v38 = vld [vmem:[%s2756_s1 + $0x10] ss:$8 sm:$0x3] }
 0x105   : > { %v884_v44 = vpop.permute.xlu1 %883 }
 0x106   : > { %v894_v15 = vmul.f32 %v889_v50, %v884_v44  ;;  %v895_v11 = vmul.f32 %v893_v9, %v884_v44  ;;  %v957_v9 = vrot.slane %v410_v21, %v2192_v59  ;;  %v2444_v44 = vrot.slane %v1786_v38, %v2189_v58 }
 0x108   : > { %v896_v34 = vadd.f32 %v894_v15, %v880_v45  ;;  %v897_v26 = vadd.f32 %v895_v11, %v881_v41  ;;  %v2447_v45 = vrot.slane %v1786_v38, %v2192_v59  ;;  %v958_v41 = vmul.f32 %v953_v3, %v948_v6  ;;  %v996_v38 = vpop.permute.xlu0 %995 }
 0x109   : > { %v959_v15 = vmul.f32 %v957_v9, %v948_v6 }
 0x10a   : > { %v916_v39 = vpop.permute.xlu1 %915  ;;  %v912_v32 = vadd.f32 %v910_v53, %v896_v34  ;;  %v913_v0 = vadd.f32 %v911_v54, %v897_v26  ;;  %v417_v34 = vsel %vm415_vm7, %v2214_v10, %v2216_v12 }
 0x10b   : > { %v926_v48 = vmul.f32 %v921_v62, %v916_v39  ;;  %v927_v49 = vmul.f32 %v925_v63, %v916_v39  ;;  %v431_v62 = vmul.f32 %v2444_v44, %v416_v8  ;;  %v432_v63 = vmul.f32 %v2447_v45, %v417_v34 }
 0x10d   : > { %v928_v33 = vadd.f32 %v926_v48, %v912_v32  ;;  %v929_v30 = vadd.f32 %v927_v49, %v913_v0  ;;  %v985_v32 = vrot.slane %v409_v56, %v2250_v28  ;;  %v989_v0 = vrot.slane %v410_v21, %v2250_v28 }
 0x10e   : > { %v1001_v10 = vrot.slane %v431_v62, %v2189_v58  ;;  %v1005_v12 = vrot.slane %v432_v63, %v2189_v58  ;;  %v1017_v3 = vrot.slane %v431_v62, %v2192_v59  ;;  %v1021_v56 = vrot.slane %v432_v63, %v2192_v59 }
 0x10f   : > { %v932_v4 = vpop.permute.xlu1 %931 }
 0x110   : > { %v942_v37 = vmul.f32 %v937_v43, %v932_v4  ;;  %v943_v50 = vmul.f32 %v941_v46, %v932_v4 }
 0x112   : > { %v944_v23 = vadd.f32 %v942_v37, %v928_v33  ;;  %v945_v36 = vadd.f32 %v943_v50, %v929_v30  ;;  %v1006_v37 = vmul.f32 %v1001_v10, %v996_v38  ;;  %v1007_v50 = vmul.f32 %v1005_v12, %v996_v38 }
 0x113   : > { %v2781_v38 = vmov 25   ;;  %v2782_v12 = vmov 27  }
 0x114   : > { %v964_v11 = vpop.permute.xlu1 %963  ;;  %v960_v26 = vadd.f32 %v958_v41, %v944_v23  ;;  %v961_v53 = vadd.f32 %v959_v15, %v945_v36  ;;  %v1033_v41 = vrot.slane %v431_v62, %v2223_v42  ;;  %v1037_v15 = vrot.slane %v432_v63, %v2223_v42 }
 0x115   : > { %v974_v54 = vmul.f32 %v969_v1, %v964_v11  ;;  %v975_v39 = vmul.f32 %v973_v5, %v964_v11  ;;  %v1049_v11 = vrot.slane %v431_v62, %v2250_v28  ;;  %v1044_v1 = vpop.permute.xlu0 %1043 }
 0x117   : > { %v976_v49 = vadd.f32 %v974_v54, %v960_v26  ;;  %v977_v43 = vadd.f32 %v975_v39, %v961_v53  ;;  %v1053_v54 = vrot.slane %v432_v63, %v2250_v28  ;;  %v1054_v39 = vmul.f32 %v1049_v11, %v1044_v1 }
 0x118   : > { %v2780_v63 = vmov 24  }
 0x119   : > { %v980_v48 = vpop.permute.xlu1 %979 }
 0x11a   : > { %v990_v46 = vmul.f32 %v985_v32, %v980_v48  ;;  %v991_v4 = vmul.f32 %v989_v0, %v980_v48  ;;  %v1055_v48 = vmul.f32 %v1053_v54, %v1044_v1 }
 0x11c   : > { %v992_v33 = vadd.f32 %v990_v46, %v976_v49  ;;  %v993_v30 = vadd.f32 %v991_v4, %v977_v43 }
 0x11e   : > { %v1012_v6 = vpop.permute.xlu1 %1011  ;;  %v1008_v21 = vadd.f32 %v1006_v37, %v992_v33  ;;  %v1009_v9 = vadd.f32 %v1007_v50, %v993_v30  ;;  %v2783_v30 = vmov 28   ;;  %v2784_v37 = vmov 30  }
 0x11f   : > { %v1022_v23 = vmul.f32 %v1017_v3, %v1012_v6  ;;  %v1023_v36 = vmul.f32 %v1021_v56, %v1012_v6  ;;  %v2785_v6 = vmov 31   ;;  %v1128_v3 = vpop.permute.xlu0 %1127 }
 0x121   : > { %v1024_v8 = vadd.f32 %v1022_v23, %v1008_v21  ;;  %v1025_v34 = vadd.f32 %v1023_v36, %v1009_v9  ;;  %v2786_v21 = vmov 33   ;;  %v2787_v36 = vmov 34  }
 0x123   : > { %v1028_v5 = vpop.permute.xlu1 %1027  ;;  %v1167_v9 = vpop.permute.xlu0 %1166 }
 0x124   : > { %v1038_v26 = vmul.f32 %v1033_v41, %v1028_v5  ;;  %v1039_v53 = vmul.f32 %v1037_v15, %v1028_v5 }
 0x126   : > { %v1040_v32 = vadd.f32 %v1038_v26, %v1024_v8  ;;  %v1041_v0 = vadd.f32 %v1039_v53, %v1025_v34 }
 0x127   : > { %v1215_v41 = vpop.permute.xlu0 %1214 }
 0x128   : > { %v1056_v49 = vadd.f32 %v1054_v39, %v1040_v32  ;;  %v1057_v43 = vadd.f32 %v1055_v48, %v1041_v0 }
 0x12a   : > { %v2471_v46 = vmax.f32 %v1056_v49, 0.0  ;;  %v2477_v62 = vmax.f32 %v1057_v43, 0.0 }
 0x12b   : > { %v2561_v11 = vpop.permute.xlu0 %1262 }
 0x12c   : > { %1068 = vrot.lane.b32.xlu0 %v2471_v46, %s1928_s27  ;;  %1060 = vrot.lane.b32.xlu1 %v2471_v46, %s1929_s28 }
 0x12f   : > { %v2565_v5 = vpop.permute.xlu0 %1310 }
 0x130   : > { %1076 = vrot.lane.b32.xlu0 %v2471_v46, %s1930_s29  ;;  %1062 = vrot.lane.b32.xlu1 %v2477_v62, %s1929_s28 }
 0x134   : > { %1084 = vrot.lane.b32.xlu0 %v2471_v46, %s1931_s30  ;;  %1070 = vrot.lane.b32.xlu1 %v2477_v62, %s1928_s27 }
 0x138   : > { %1092 = vrot.lane.b32.xlu0 %v2471_v46, %s1932_s7  ;;  %1078 = vrot.lane.b32.xlu1 %v2477_v62, %s1930_s29  ;;  %s251_s29 = scalar_lea.vmem %s2761_s6, %s1789_s23 }
 0x13c   : > { %1100 = vrot.lane.b32.xlu0 %v2471_v46, %s1933_s8  ;;  %1086 = vrot.lane.b32.xlu1 %v2477_v62, %s1931_s30 }
 0x140   : > { %1108 = vrot.lane.b32.xlu0 %v2471_v46, %s1934_s9  ;;  %1094 = vrot.lane.b32.xlu1 %v2477_v62, %s1932_s7 }
 0x144   : > { %1116 = vrot.lane.b32.xlu0 %v2471_v46, %s1935_s10  ;;  %1102 = vrot.lane.b32.xlu1 %v2477_v62, %s1933_s8 }
 0x148   : > { %1358 = vperm.xlu0 %1895, %v2147_v40   ;;  %1110 = vrot.lane.b32.xlu1 %v2477_v62, %s1934_s9 }
 0x14c   : > { %1898 = vset.pattern.permute.xlu0 %v1947_v16  ;;  %1374 = vperm.xlu1 %1896, %v2147_v40   ;;  %v2775_v16 = vmov 29  }
 0x14d   : > { %1406 = vperm.xlu0 %1898, %v2147_v40  }
 0x150   : > { %1118 = vrot.lane.b32.xlu1 %v2477_v62, %s1935_s10 }
 0x151   : > { %1901 = vset.pattern.permute.xlu0 %v1949_v18  ;;  %1897 = vset.pattern.permute.xlu1 %v1956_v25  ;;  %v2776_v18 = vmov 21   ;;  %v2777_v25 = vmov 32  }
 0x152   : > { %1454 = vperm.xlu0 %1901, %v2147_v40  }
 0x154   : > { %1390 = vperm.xlu1 %1897, %v2147_v40  }
 0x156   : > { %1904 = vset.pattern.permute.xlu0 %v1951_v20  ;;  %v1135_v20 = vpop.permute.xlu1 %1134 }
 0x157   : > { %1502 = vperm.xlu0 %1904, %v2147_v40  }
 0x158   : > { %1899 = vset.pattern.permute.xlu1 %v1958_v27 }
 0x159   : > { %1422 = vperm.xlu1 %1899, %v2147_v40  }
 0x15a   : > { %v1151_v27 = vpop.permute.xlu1 %1150 }
 0x15b   : > { %1907 = vset.pattern.permute.xlu0 %v1953_v22  ;;  %v2778_v22 = vmov 22  }
 0x15c   : > { %1550 = vperm.xlu0 %1907, %v2147_v40  }
 0x15d   : > { %1900 = vset.pattern.permute.xlu1 %v1960_v29  ;;  %v2779_v29 = vmov 35  }
 0x15e   : > { %1438 = vperm.xlu1 %1900, %v2147_v40   ;;  %v1183_v4 = vpop.permute.xlu1 %1182 }
 0x160   : > { %1910 = vset.pattern.permute.xlu0 %v2775_v16 }
 0x161   : > { %1598 = vperm.xlu0 %1910, %v2147_v40  }
 0x162   : > { %1902 = vset.pattern.permute.xlu1 %v2776_v18  ;;  %v2537_v10 = vpop.permute.xlu1 %1198 }
 0x163   : > { %1470 = vperm.xlu1 %1902, %v2147_v40  }
 0x165   : > { %1913 = vset.pattern.permute.xlu0 %v2777_v25 }
 0x166   : > { %1646 = vperm.xlu0 %1913, %v2147_v40   ;;  %v2541_v33 = vpop.permute.xlu1 %1230 }
 0x167   : > { %1903 = vset.pattern.permute.xlu1 %v2778_v22 }
 0x168   : > { %1486 = vperm.xlu1 %1903, %v2147_v40  }
 0x16a   : > { %1916 = vset.pattern.permute.xlu0 %v2779_v29  ;;  %v2546_v50 = vpop.permute.xlu1 %1246 }
 0x16b   : > { %1694 = vperm.xlu0 %1916, %v2147_v40  }
 0x16c   : > { %1905 = vset.pattern.permute.xlu1 %v2780_v63 }
 0x16d   : > { %1518 = vperm.xlu1 %1905, %v2147_v40  }
 0x16e   : > { %v2551_v56 = vpop.permute.xlu1 %1278 }
 0x171   : > { %1906 = vset.pattern.permute.xlu1 %v2781_v38 }
 0x172   : > { %1534 = vperm.xlu1 %1906, %v2147_v40   ;;  %v2555_v23 = vpop.permute.xlu1 %1294 }
 0x176   : > { %1908 = vset.pattern.permute.xlu1 %v2782_v12  ;;  %v2559_v15 = vpop.permute.xlu1 %1326 }
 0x177   : > { %1566 = vperm.xlu1 %1908, %v2147_v40  }
 0x17a   : > { %v2563_v1 = vpop.permute.xlu1 %1342 }
 0x17b   : > { %1909 = vset.pattern.permute.xlu1 %v2783_v30 }
 0x17c   : > { %1582 = vperm.xlu1 %1909, %v2147_v40  }
 0x180   : > { %1911 = vset.pattern.permute.xlu1 %v2784_v37 }
 0x181   : > { %1614 = vperm.xlu1 %1911, %v2147_v40  }
 0x185   : > { %1912 = vset.pattern.permute.xlu1 %v2785_v6 }
 0x186   : > { %1630 = vperm.xlu1 %1912, %v2147_v40  }
 0x18a   : > { %1914 = vset.pattern.permute.xlu1 %v2786_v21 }
 0x18b   : > { %1662 = vperm.xlu1 %1914, %v2147_v40  }
 0x18f   : > { %1915 = vset.pattern.permute.xlu1 %v2787_v36 }
 0x190   : > { %1678 = vperm.xlu1 %1915, %v2147_v40  }
 0x19e   : > { %v1061_v8 = vpop.permute.xlu1 %1060  ;;  %v1069_v26 = vpop.permute.xlu0 %1068 }
 0x1a2   : > { %v1063_v34 = vpop.permute.xlu1 %1062  ;;  %v1077_v38 = vpop.permute.xlu0 %1076 }
 0x1a3   : > { %v1064_v53 = vsel %vm262_vm0, %v1061_v8, %v1063_v34  ;;  %v1065_v54 = vsel %vm262_vm0, %v1063_v34, %v1061_v8 }
 0x1a4   : > { %v1066_v40 = vmul.f32 %v1065_v54, %v2197_v60  ;;  %v1067_v39 = vmul.f32 %v1064_v53, %v2200_v61 }
 0x1a6   : > { %v1140_v32 = vrot.slane %v1066_v40, %v2189_v58  ;;  %v1144_v0 = vrot.slane %v1067_v39, %v2189_v58  ;;  %v1156_v48 = vrot.slane %v1066_v40, %v2192_v59  ;;  %v1160_v49 = vrot.slane %v1067_v39, %v2192_v59  ;;  %v1071_v43 = vpop.permute.xlu1 %1070 }
 0x1a7   : > { %v1172_v16 = vrot.slane %v1066_v40, %v2223_v42  ;;  %v1176_v18 = vrot.slane %v1067_v39, %v2223_v42  ;;  %v1188_v29 = vrot.slane %v1066_v40, %v2250_v28  ;;  %v1192_v60 = vrot.slane %v1067_v39, %v2250_v28 }
 0x1a8   : > { %v1145_v25 = vmul.f32 %v1140_v32, %v1135_v20  ;;  %v1146_v22 = vmul.f32 %v1144_v0, %v1135_v20  ;;  %v1161_v61 = vmul.f32 %v1156_v48, %v1151_v27  ;;  %v1162_v63 = vmul.f32 %v1160_v49, %v1151_v27  ;;  %v1085_v49 = vpop.permute.xlu0 %1084 }
 0x1a9   : > { %v1072_v37 = vsel %vm283_vm1, %v1069_v26, %v1071_v43  ;;  %v1073_v6 = vsel %vm283_vm1, %v1071_v43, %v1069_v26  ;;  %v1177_v21 = vmul.f32 %v1172_v16, %v1167_v9  ;;  %v1178_v36 = vmul.f32 %v1176_v18, %v1167_v9 }
 0x1aa   : > { %v1147_v12 = vadd.f32 %v1145_v25, %v1128_v3  ;;  %v1148_v30 = vadd.f32 %v1146_v22, %v1128_v3  ;;  %v1074_v8 = vmul.f32 %v1073_v6, %v2236_v47  ;;  %v1075_v20 = vmul.f32 %v1072_v37, %v2239_v14  ;;  %v1079_v34 = vpop.permute.xlu1 %1078 }
 0x1ab   : > { %v1193_v40 = vmul.f32 %v1188_v29, %v1183_v4  ;;  %v1194_v27 = vmul.f32 %v1192_v60, %v1183_v4  ;;  %v1080_v47 = vsel %vm305_vm2, %v1077_v38, %v1079_v34  ;;  %v1081_v14 = vsel %vm305_vm2, %v1079_v34, %v1077_v38 }
 0x1ac   : > { %v1163_v53 = vadd.f32 %v1161_v61, %v1147_v12  ;;  %v1164_v54 = vadd.f32 %v1162_v63, %v1148_v30  ;;  %v1204_v39 = vrot.slane %v1074_v8, %v2189_v58  ;;  %v1208_v3 = vrot.slane %v1075_v20, %v2189_v58  ;;  %v2607_v34 = vpop.permute.xlu0 %1092 }
 0x1ad   : > { %v1220_v32 = vrot.slane %v1074_v8, %v2192_v59  ;;  %v1224_v0 = vrot.slane %v1075_v20, %v2192_v59  ;;  %v1236_v9 = vrot.slane %v1074_v8, %v2223_v42  ;;  %v1240_v4 = vrot.slane %v1075_v20, %v2223_v42 }
 0x1ae   : > { %v1179_v26 = vadd.f32 %v1177_v21, %v1163_v53  ;;  %v1180_v48 = vadd.f32 %v1178_v36, %v1164_v54  ;;  %v1209_v18 = vmul.f32 %v1204_v39, %v2537_v10  ;;  %v1210_v25 = vmul.f32 %v1208_v3, %v2537_v10 }
 0x1af   : > { %v1225_v22 = vmul.f32 %v1220_v32, %v1215_v41  ;;  %v1226_v29 = vmul.f32 %v1224_v0, %v1215_v41  ;;  %v1082_v60 = vmul.f32 %v1081_v14, %v2271_v7  ;;  %v1083_v61 = vmul.f32 %v1080_v47, %v2274_v24  ;;  %v1087_v7 = vpop.permute.xlu1 %1086 }
 0x1b0   : > { %v1195_v43 = vadd.f32 %v1193_v40, %v1179_v26  ;;  %v1196_v16 = vadd.f32 %v1194_v27, %v1180_v48  ;;  %v1252_v38 = vrot.slane %v1074_v8, %v2250_v28  ;;  %v1256_v30 = vrot.slane %v1075_v20, %v2250_v28  ;;  %v2615_v32 = vpop.permute.xlu0 %1100 }
 0x1b1   : > { %v1241_v21 = vmul.f32 %v1236_v9, %v2541_v33  ;;  %v1242_v36 = vmul.f32 %v1240_v4, %v2541_v33  ;;  %v1268_v10 = vrot.slane %v1082_v60, %v2189_v58  ;;  %v1272_v41 = vrot.slane %v1083_v61, %v2189_v58 }
 0x1b2   : > { %v1211_v63 = vadd.f32 %v1209_v18, %v1195_v43  ;;  %v1212_v12 = vadd.f32 %v1210_v25, %v1196_v16  ;;  %v1257_v54 = vmul.f32 %v1252_v38, %v2546_v50  ;;  %v1258_v8 = vmul.f32 %v1256_v30, %v2546_v50 }
 0x1b3   : > { %v1273_v27 = vmul.f32 %v1268_v10, %v2561_v11  ;;  %v1274_v39 = vmul.f32 %v1272_v41, %v2561_v11  ;;  %v1284_v33 = vrot.slane %v1082_v60, %v2192_v59  ;;  %v1288_v3 = vrot.slane %v1083_v61, %v2192_v59  ;;  %v2617_v0 = vpop.permute.xlu1 %1094 }
 0x1b4   : > { %v1227_v37 = vadd.f32 %v1225_v22, %v1211_v63  ;;  %v1228_v6 = vadd.f32 %v1226_v29, %v1212_v12  ;;  %v1300_v14 = vrot.slane %v1082_v60, %v2223_v42  ;;  %v1304_v9 = vrot.slane %v1083_v61, %v2223_v42  ;;  %v2629_v22 = vpop.permute.xlu0 %1108 }
 0x1b5   : > { %v1289_v47 = vmul.f32 %v1284_v33, %v2551_v56  ;;  %v1290_v50 = vmul.f32 %v1288_v3, %v2551_v56  ;;  %v1088_v11 = vsel %vm327_vm3, %v1085_v49, %v1087_v7  ;;  %v1089_v4 = vsel %vm327_vm3, %v1087_v7, %v1085_v49 }
 0x1b6   : > { %v1243_v24 = vadd.f32 %v1241_v21, %v1227_v37  ;;  %v1244_v53 = vadd.f32 %v1242_v36, %v1228_v6  ;;  %v1316_v18 = vrot.slane %v1082_v60, %v2250_v28  ;;  %v1320_v25 = vrot.slane %v1083_v61, %v2250_v28 }
 0x1b7   : > { %v2631_v29 = vpop.permute.xlu1 %1102  ;;  %v1305_v56 = vmul.f32 %v1300_v14, %v2555_v23  ;;  %v1306_v63 = vmul.f32 %v1304_v9, %v2555_v23  ;;  %v1090_v12 = vmul.f32 %v1089_v4, %v2303_v17  ;;  %v1091_v38 = vmul.f32 %v1088_v11, %v2306_v13 }
 0x1b8   : > { %v1259_v20 = vadd.f32 %v1257_v54, %v1243_v24  ;;  %v1260_v40 = vadd.f32 %v1258_v8, %v1244_v53  ;;  %v1321_v61 = vmul.f32 %v1316_v18, %v2565_v5  ;;  %v1322_v6 = vmul.f32 %v1320_v25, %v2565_v5  ;;  %v2641_v21 = vpop.permute.xlu0 %1116 }
 0x1b9   : > { %v1332_v37 = vrot.slane %v1090_v12, %v2189_v58  ;;  %v1336_v60 = vrot.slane %v1091_v38, %v2189_v58  ;;  %v1348_v41 = vrot.slane %v1090_v12, %v2192_v59  ;;  %v1352_v7 = vrot.slane %v1091_v38, %v2192_v59 }
 0x1ba   : > { %v1275_v26 = vadd.f32 %v1273_v27, %v1259_v20  ;;  %v1276_v48 = vadd.f32 %v1274_v39, %v1260_v40  ;;  %v1364_v5 = vrot.slane %v1090_v12, %v2223_v42  ;;  %v1368_v20 = vrot.slane %v1091_v38, %v2223_v42 }
 0x1bb   : > { %v2643_v36 = vpop.permute.xlu1 %1110  ;;  %v1337_v17 = vmul.f32 %v1332_v37, %v2559_v15  ;;  %v1338_v13 = vmul.f32 %v1336_v60, %v2559_v15  ;;  %v1380_v40 = vrot.slane %v1090_v12, %v2250_v28  ;;  %v1384_v27 = vrot.slane %v1091_v38, %v2250_v28 }
 0x1bc   : > { %v1291_v43 = vadd.f32 %v1289_v47, %v1275_v26  ;;  %v1292_v16 = vadd.f32 %v1290_v50, %v1276_v48  ;;  %v1353_v39 = vmul.f32 %v1348_v41, %v2563_v1  ;;  %v1354_v15 = vmul.f32 %v1352_v7, %v2563_v1 }
 0x1bd   : > { %v1400_v4 = vrot.slane %v2477_v62, %v2189_v58  ;;  %v1412_v12 = vrot.slane %v2471_v46, %v2192_v59  ;;  %v1416_v38 = vrot.slane %v2477_v62, %v2192_v59 }
 0x1be   : > { %v1307_v30 = vadd.f32 %v1305_v56, %v1291_v43  ;;  %v1308_v49 = vadd.f32 %v1306_v63, %v1292_v16  ;;  %v1396_v43 = vrot.slane %v2471_v46, %v2189_v58 }
 0x1c0   : > { %v1323_v10 = vadd.f32 %v1321_v61, %v1307_v30  ;;  %v1324_v23 = vadd.f32 %v1322_v6, %v1308_v49  ;;  %v1432_v61 = vrot.slane %v2477_v62, %v2223_v42 }
 0x1c2   : > { %v1339_v54 = vadd.f32 %v1337_v17, %v1323_v10  ;;  %v1340_v8 = vadd.f32 %v1338_v13, %v1324_v23  ;;  %v1428_v10 = vrot.slane %v2471_v46, %v2223_v42  ;;  %v1096_v23 = vsel %vm349_vm4, %v2607_v34, %v2617_v0 }
 0x1c3   : > { %v1097_v17 = vsel %vm349_vm4, %v2617_v0, %v2607_v34 }
 0x1c4   : > { %v1355_v48 = vadd.f32 %v1353_v39, %v1339_v54  ;;  %v1356_v47 = vadd.f32 %v1354_v15, %v1340_v8  ;;  %v1099_v54 = vmul.f32 %v1097_v17, %v2365_v31  ;;  %v1448_v8 = vrot.slane %v2477_v62, %v2250_v28 }
 0x1c7   : > { %v1359_v24 = vpop.permute.xlu0 %1358 }
 0x1c8   : > { %v1369_v33 = vmul.f32 %v1364_v5, %v1359_v24  ;;  %v1370_v3 = vmul.f32 %v1368_v20, %v1359_v24  ;;  %v1444_v5 = vrot.slane %v2471_v46, %v2250_v28  ;;  %v1104_v46 = vsel %vm371_vm5, %v2615_v32, %v2631_v29 }
 0x1ca   : > { %v1371_v9 = vadd.f32 %v1369_v33, %v1355_v48  ;;  %v1372_v11 = vadd.f32 %v1370_v3, %v1356_v47  ;;  %v1464_v33 = vrot.slane %v1099_v54, %v2189_v58 }
 0x1cb   : > { %v1375_v53 = vpop.permute.xlu1 %1374 }
 0x1cc   : > { %v1385_v50 = vmul.f32 %v1380_v40, %v1375_v53  ;;  %v1386_v14 = vmul.f32 %v1384_v27, %v1375_v53  ;;  %v1407_v63 = vpop.permute.xlu0 %1406  ;;  %v1098_v53 = vmul.f32 %v1096_v23, %v2362_v19 }
 0x1cd   : > { %v1417_v37 = vmul.f32 %v1412_v12, %v1407_v63  ;;  %v1418_v60 = vmul.f32 %v1416_v38, %v1407_v63 }
 0x1ce   : > { %v1387_v18 = vadd.f32 %v1385_v50, %v1371_v9  ;;  %v1388_v25 = vadd.f32 %v1386_v14, %v1372_v11  ;;  %v1460_v0 = vrot.slane %v1098_v53, %v2189_v58  ;;  %v1476_v62 = vrot.slane %v1098_v53, %v2192_v59 }
 0x1cf   : > { %v2655_v26 = vpop.permute.xlu1 %1118  ;;  %v1480_v50 = vrot.slane %v1099_v54, %v2192_v59  ;;  %v1105_v14 = vsel %vm371_vm5, %v2631_v29, %v2615_v32  ;;  %v1508_v32 = vrot.slane %v1098_v53, %v2250_v28  ;;  %v1512_v29 = vrot.slane %v1099_v54, %v2250_v28 }
 0x1d1   : > { %v1455_v34 = vpop.permute.xlu0 %1454 }
 0x1d2   : > { %v1465_v48 = vmul.f32 %v1460_v0, %v1455_v34  ;;  %v1466_v31 = vmul.f32 %v1464_v33, %v1455_v34 }
 0x1d3   : > { %v1391_v16 = vpop.permute.xlu1 %1390 }
 0x1d4   : > { %v1401_v1 = vmul.f32 %v1396_v43, %v1391_v16  ;;  %v1402_v56 = vmul.f32 %v1400_v4, %v1391_v16  ;;  %v1492_v16 = vrot.slane %v1098_v53, %v2223_v42  ;;  %v1112_v53 = vsel %vm393_vm6, %v2629_v22, %v2643_v36 }
 0x1d6   : > { %v1403_v30 = vadd.f32 %v1401_v1, %v1387_v18  ;;  %v1404_v49 = vadd.f32 %v1402_v56, %v1388_v25  ;;  %v1496_v18 = vrot.slane %v1099_v54, %v2223_v42  ;;  %v1106_v25 = vmul.f32 %v1104_v46, %v2388_v52 }
 0x1d7   : > { %v1107_v1 = vmul.f32 %v1105_v14, %v2391_v57  ;;  %v1113_v54 = vsel %vm393_vm6, %v2643_v36, %v2629_v22 }
 0x1d8   : > { %v1423_v6 = vpop.permute.xlu1 %1422  ;;  %v1419_v13 = vadd.f32 %v1417_v37, %v1403_v30  ;;  %v1420_v41 = vadd.f32 %v1418_v60, %v1404_v49  ;;  %v1503_v49 = vpop.permute.xlu0 %1502  ;;  %v1524_v23 = vrot.slane %v1106_v25, %v2189_v58  ;;  %v1572_v22 = vrot.slane %v1106_v25, %v2250_v28 }
 0x1d9   : > { %v1433_v7 = vmul.f32 %v1428_v10, %v1423_v6  ;;  %v1434_v24 = vmul.f32 %v1432_v61, %v1423_v6  ;;  %v1513_v61 = vmul.f32 %v1508_v32, %v1503_v49  ;;  %v1514_v6 = vmul.f32 %v1512_v29, %v1503_v49 }
 0x1da   : > { %v1528_v52 = vrot.slane %v1107_v1, %v2189_v58  ;;  %v1560_v34 = vrot.slane %v1107_v1, %v2223_v42  ;;  %v1576_v36 = vrot.slane %v1107_v1, %v2250_v28  ;;  %v1120_v29 = vsel %vm415_vm7, %v2641_v21, %v2655_v26 }
 0x1db   : > { %v1435_v40 = vadd.f32 %v1433_v7, %v1419_v13  ;;  %v1436_v27 = vadd.f32 %v1434_v24, %v1420_v41  ;;  %v1540_v7 = vrot.slane %v1106_v25, %v2192_v59  ;;  %v1544_v24 = vrot.slane %v1107_v1, %v2192_v59 }
 0x1dd   : > { %v1439_v20 = vpop.permute.xlu1 %1438 }
 0x1de   : > { %v1449_v39 = vmul.f32 %v1444_v5, %v1439_v20  ;;  %v1450_v15 = vmul.f32 %v1448_v8, %v1439_v20 }
 0x1e0   : > { %v1451_v3 = vadd.f32 %v1449_v39, %v1435_v40  ;;  %v1452_v19 = vadd.f32 %v1450_v15, %v1436_v27  ;;  %v1551_v39 = vpop.permute.xlu0 %1550  ;;  %v1556_v15 = vrot.slane %v1106_v25, %v2223_v42 }
 0x1e2   : > { %v1471_v47 = vpop.permute.xlu1 %1470  ;;  %v1467_v9 = vadd.f32 %v1465_v48, %v1451_v3  ;;  %v1468_v11 = vadd.f32 %v1466_v31, %v1452_v19  ;;  %v1114_v3 = vmul.f32 %v1112_v53, %v2416_v35  ;;  %v1115_v19 = vmul.f32 %v1113_v54, %v2419_v51 }
 0x1e3   : > { %v1481_v4 = vmul.f32 %v1476_v62, %v1471_v47  ;;  %v1482_v43 = vmul.f32 %v1480_v50, %v1471_v47  ;;  %v1561_v48 = vmul.f32 %v1556_v15, %v1551_v39  ;;  %v1562_v31 = vmul.f32 %v1560_v34, %v1551_v39 }
 0x1e4   : > { %v1608_v25 = vrot.slane %v1115_v19, %v2192_v59  ;;  %v1620_v49 = vrot.slane %v1114_v3, %v2223_v42  ;;  %v1624_v32 = vrot.slane %v1115_v19, %v2223_v42 }
 0x1e5   : > { %v1483_v63 = vadd.f32 %v1481_v4, %v1467_v9  ;;  %v1484_v12 = vadd.f32 %v1482_v43, %v1468_v11  ;;  %v1588_v9 = vrot.slane %v1114_v3, %v2189_v58  ;;  %v1592_v11 = vrot.slane %v1115_v19, %v2189_v58 }
 0x1e7   : > { %v1487_v56 = vpop.permute.xlu1 %1486 }
 0x1e8   : > { %v1497_v38 = vmul.f32 %v1492_v16, %v1487_v56  ;;  %v1498_v30 = vmul.f32 %v1496_v18, %v1487_v56  ;;  %v1599_v18 = vpop.permute.xlu0 %1598  ;;  %v1604_v56 = vrot.slane %v1114_v3, %v2192_v59 }
 0x1ea   : > { %v1499_v37 = vadd.f32 %v1497_v38, %v1483_v63  ;;  %v1500_v60 = vadd.f32 %v1498_v30, %v1484_v12  ;;  %v1609_v12 = vmul.f32 %v1604_v56, %v1599_v18  ;;  %v1610_v38 = vmul.f32 %v1608_v25, %v1599_v18 }
 0x1ec   : > { %v1519_v10 = vpop.permute.xlu1 %1518  ;;  %v1515_v57 = vadd.f32 %v1513_v61, %v1499_v37  ;;  %v1516_v17 = vadd.f32 %v1514_v6, %v1500_v60  ;;  %v1121_v37 = vsel %vm415_vm7, %v2655_v26, %v2641_v21  ;;  %v1647_v54 = vpop.permute.xlu0 %1646 }
 0x1ed   : > { %v1529_v13 = vmul.f32 %v1524_v23, %v1519_v10  ;;  %v1530_v41 = vmul.f32 %v1528_v52, %v1519_v10  ;;  %v1122_v23 = vmul.f32 %v1120_v29, %v2444_v44  ;;  %v1123_v52 = vmul.f32 %v1121_v37, %v2447_v45 }
 0x1ef   : > { %v1531_v5 = vadd.f32 %v1529_v13, %v1515_v57  ;;  %v1532_v20 = vadd.f32 %v1530_v41, %v1516_v17  ;;  %v1636_v57 = vrot.slane %v1114_v3, %v2250_v28  ;;  %v1640_v17 = vrot.slane %v1115_v19, %v2250_v28 }
 0x1f0   : > { %v1652_v55 = vrot.slane %v1122_v23, %v2189_v58  ;;  %v1656_v21 = vrot.slane %v1123_v52, %v2189_v58  ;;  %v1668_v45 = vrot.slane %v1122_v23, %v2192_v59  ;;  %v1700_v58 = vrot.slane %v1122_v23, %v2250_v28  ;;  %v1695_v19 = vpop.permute.xlu0 %1694 }
 0x1f1   : > { %v1535_v8 = vpop.permute.xlu1 %1534  ;;  %v1704_v3 = vrot.slane %v1123_v52, %v2250_v28 }
 0x1f2   : > { %v1545_v40 = vmul.f32 %v1540_v7, %v1535_v8  ;;  %v1546_v27 = vmul.f32 %v1544_v24, %v1535_v8  ;;  %v1658_v44 = vmul.f32 %v1656_v21, %v1647_v54 }
 0x1f4   : > { %v1547_v0 = vadd.f32 %v1545_v40, %v1531_v5  ;;  %v1548_v33 = vadd.f32 %v1546_v27, %v1532_v20  ;;  %v1657_v5 = vmul.f32 %v1652_v55, %v1647_v54  ;;  %v1672_v40 = vrot.slane %v1123_v52, %v2192_v59 }
 0x1f6   : > { %v1567_v47 = vpop.permute.xlu1 %1566  ;;  %v1563_v62 = vadd.f32 %v1561_v48, %v1547_v0  ;;  %v1564_v50 = vadd.f32 %v1562_v31, %v1548_v33  ;;  %v1684_v0 = vrot.slane %v1122_v23, %v2223_v42  ;;  %v1688_v33 = vrot.slane %v1123_v52, %v2223_v42 }
 0x1f7   : > { %v1577_v46 = vmul.f32 %v1572_v22, %v1567_v47  ;;  %v1578_v14 = vmul.f32 %v1576_v36, %v1567_v47  ;;  %v1705_v36 = vmul.f32 %v1700_v58, %v1695_v19 }
 0x1f9   : > { %v1579_v43 = vadd.f32 %v1577_v46, %v1563_v62  ;;  %v1580_v35 = vadd.f32 %v1578_v14, %v1564_v50  ;;  %v1706_v62 = vmul.f32 %v1704_v3, %v1695_v19 }
 0x1fb   : > { %v1583_v4 = vpop.permute.xlu1 %1582 }
 0x1fc   : > { %v1593_v16 = vmul.f32 %v1588_v9, %v1583_v4  ;;  %v1594_v51 = vmul.f32 %v1592_v11, %v1583_v4  ;;  %v1918_v11 = vld [vmem:[%s2024_s26] sm:$0xff] }
 0x1fe   : > { %v1595_v63 = vadd.f32 %v1593_v16, %v1579_v43  ;;  %v1596_v1 = vadd.f32 %v1594_v51, %v1580_v35 }
 0x200   : > { %v1615_v30 = vpop.permute.xlu1 %1614  ;;  %v1611_v60 = vadd.f32 %v1609_v12, %v1595_v63  ;;  %v1612_v61 = vadd.f32 %v1610_v38, %v1596_v1 }
 0x201   : > { %v1625_v6 = vmul.f32 %v1620_v49, %v1615_v30  ;;  %v1626_v10 = vmul.f32 %v1624_v32, %v1615_v30 }
 0x203   : > { %v1627_v41 = vadd.f32 %v1625_v6, %v1611_v60  ;;  %v1628_v7 = vadd.f32 %v1626_v10, %v1612_v61 }
 0x205   : > { %v1631_v13 = vpop.permute.xlu1 %1630 }
 0x206   : > { %v1641_v24 = vmul.f32 %v1636_v57, %v1631_v13  ;;  %v1642_v53 = vmul.f32 %v1640_v17, %v1631_v13 }
 0x208   : > { %v1643_v26 = vadd.f32 %v1641_v24, %v1627_v41  ;;  %v1644_v8 = vadd.f32 %v1642_v53, %v1628_v7 }
 0x20a   : > { %v1663_v20 = vpop.permute.xlu1 %1662  ;;  %v1659_v27 = vadd.f32 %v1657_v5, %v1643_v26  ;;  %v1660_v39 = vadd.f32 %v1658_v44, %v1644_v8 }
 0x20b   : > { %v1673_v15 = vmul.f32 %v1668_v45, %v1663_v20  ;;  %v1674_v34 = vmul.f32 %v1672_v40, %v1663_v20 }
 0x20d   : > { %v1675_v31 = vadd.f32 %v1673_v15, %v1659_v27  ;;  %v1676_v47 = vadd.f32 %v1674_v34, %v1660_v39 }
 0x20f   : > { %v1679_v48 = vpop.permute.xlu1 %1678 }
 0x210   : > { %v1689_v22 = vmul.f32 %v1684_v0, %v1679_v48  ;;  %v1690_v59 = vmul.f32 %v1688_v33, %v1679_v48 }
 0x212   : > { %v1691_v50 = vadd.f32 %v1689_v22, %v1675_v31  ;;  %v1692_v46 = vadd.f32 %v1690_v59, %v1676_v47 }
 0x214   : > { %v1707_v14 = vadd.f32 %v1705_v36, %v1691_v50  ;;  %v1708_v9 = vadd.f32 %v1706_v62, %v1692_v46 }
 0x216   : > { %v1709_v4 = vadd.f32 %v1918_v11, %v1707_v14  ;;  %v1710_v42 = vadd.f32 %v1708_v9, %v2035_v2 }
 0x218   : > { %v1713_v28 = vcombine.low %v1709_v4, %v1710_v42 }
 0x21a   : > { %1715 = vst [vmem:[%s251_s29] sm:$0xff] %v1713_v28 }
 0x21b PF: > { %s16_s21 = sadd.s32 1, %s1925_s21  }
 0x21c   : > { %p13_p4 = scmp.ge.s32.totalorder %s16_s21, 4  }
 0x21e   :  { %15 = sbr.rel (!%p13_p4) target bundleno = 1 (0x1), region = 81 }

</bundles_post_ra>
